<compile_context>
chip_gen: v6e
topology: v6e:2x2x1
jax: 0.10.0
libtpu: 0.0.40
codegen_flags: <defaults>
</compile_context>

<pallas_src>
import math

import numpy as np

import jax
import jax.numpy as jnp
from jax import lax
from jax.experimental import pallas as pl
from jax.experimental.pallas import tpu as pltpu  # noqa: F401  (kept for CompilerParams when a batch grid is added)

# ----------------------- synthetic "config" (small shapes) -----------------------
IMG = 16            # H = W
IN_CH = 3
PATCH = 8
EMBED_DIM = 32      # config.vit_embed_dim
DEPTH = 2           # config.vit_depth
NUM_HEADS = 4       # config.vit_num_heads
MLP_DIM = 64        # config.vit_mlp_dim
OUT_FEATS = 16      # config.vit_output_features_before_fusion
NUM_PATCHES = (IMG // PATCH) ** 2       # 4
SEQ = NUM_PATCHES + 1                   # 5 (CLS + patches)
HEAD_DIM = EMBED_DIM // NUM_HEADS       # 8
PATCH_DIM = IN_CH * PATCH * PATCH       # 192
LN_EPS = 1e-5
NEG_INF = -1e30
F32 = jnp.float32
BF16 = jnp.bfloat16


# --------------------------------- kernel helpers ---------------------------------
def _ln(x, g, b):
    mu = jnp.mean(x, axis=-1, keepdims=True)
    var = jnp.mean((x - mu) ** 2, axis=-1, keepdims=True)
    return (x - mu) * lax.rsqrt(var + LN_EPS) * g + b


# ------------------------------- fused Pallas kernel -------------------------------
def fused_vit_kernel(tok_ref, pe_w_ref, bias_ref,
                     sel_rep_ref, sel_fold_ref, head_mask_ref, batch_bias_ref,
                     ln1g_ref, ln1b_ref, wqkv_ref, bqkv_ref, wo_ref, bo_ref,
                     ln2g_ref, ln2b_ref, w1_ref, b1_ref, w2_ref, b2_ref,
                     norm_g_ref, norm_b_ref, head_w_ref, head_b_ref,
                     out_ref, attn_ref):
    scale = 1.0 / math.sqrt(HEAD_DIM)

    # ---- patch embedding; CLS token, positional embedding and conv bias are folded
    #      into bias_ref by the wrapper (CLS rows of tok_ref are zero) -----------------
    x = jnp.dot(tok_ref[...], pe_w_ref[...], preferred_element_type=F32) + bias_ref[...]

    # --------------------------- transformer encoder blocks -----------------------
    # NOTE: if DEPTH grows, move this onto an "arbitrary" grid axis / lax.fori_loop
    # instead of Python unrolling (scaling guard; fine at DEPTH=2).
    attn = None
    for d in range(DEPTH):
        h1 = _ln(x, ln1g_ref[d], ln1b_ref[d])
        qkv = jnp.dot(h1.astype(BF16), wqkv_ref[d],
                      preferred_element_type=F32) + bqkv_ref[d]                  # (BN, 3D)
        q = qkv[:, 0:EMBED_DIM]
        k = qkv[:, EMBED_DIM:2 * EMBED_DIM]
        v = qkv[:, 2 * EMBED_DIM:3 * EMBED_DIM]

        # stack all (batch, head) pairs along rows; zero out the wrong-head columns
        q_bd = jnp.dot(sel_rep_ref[...], q.astype(BF16),
                       preferred_element_type=F32) * head_mask_ref[...]          # (BHN, D)
        scores = lax.dot_general(q_bd.astype(BF16), k.astype(BF16),
                                 (((1,), (1,)), ((), ())),
                                 preferred_element_type=F32) * scale             # (BHN, BN)
        scores = scores + batch_bias_ref[...]          # forbid cross-batch attention (f32)
        scores = scores - jnp.max(scores, axis=-1, keepdims=True)
        p = jnp.exp(scores)
        attn = p * pl.reciprocal(jnp.sum(p, axis=-1, keepdims=True), approx=True)

        # one context matmul for all heads, mask wrong-head columns, fold heads back
        ctx_bd = jnp.dot(attn.astype(BF16), v.astype(BF16),
                         preferred_element_type=F32) * head_mask_ref[...]        # (BHN, D)
        ctx = jnp.dot(sel_fold_ref[...], ctx_bd.astype(BF16),
                      preferred_element_type=F32)                                # (BN, D)
        x = x + jnp.dot(ctx.astype(BF16), wo_ref[d],
                        preferred_element_type=F32) + bo_ref[d]

        h2 = _ln(x, ln2g_ref[d], ln2b_ref[d])
        a = jnp.dot(h2.astype(BF16), w1_ref[d], preferred_element_type=F32) + b1_ref[d]
        a = jax.nn.gelu(a, approximate=True)
        x = x + jnp.dot(a.astype(BF16), w2_ref[d], preferred_element_type=F32) + b2_ref[d]

    # ---- single contiguous store of the last layer's attention, (BHN, BN) layout ----
    attn_ref[...] = attn

    # ---- final LayerNorm + head over ALL tokens (CLS rows sliced in the wrapper) ----
    y = _ln(x, norm_g_ref[...], norm_b_ref[...])
    out_ref[...] = jnp.dot(y.astype(BF16), head_w_ref[...],
                           preferred_element_type=F32) + head_b_ref[...]


# --------------------------------- wrappers ----------------------------------------
def patchify(x):
    # x: (B, C, H, W) NCHW -> (B, P, C*ph*pw), matching Conv2d(kernel=stride=PATCH)
    B, C, H, W = x.shape
    p = PATCH
    x = x.reshape(B, C, H // p, p, W // p, p)
    x = x.transpose(0, 2, 4, 1, 3, 5)                   # (B, gh, gw, C, p, p)
    return x.reshape(B, (H // p) * (W // p), C * p * p)


def _build_masks(B):
    # Static constants (depend only on B); built host-side, passed as tiny VMEM operands.
    HN = NUM_HEADS * SEQ
    BN = B * SEQ
    BHN = B * HN
    r = np.arange(BHN)[:, None]
    c = np.arange(BN)[None, :]
    same_batch = (r // HN) == (c // SEQ)
    same_tok = (r % SEQ) == (c % SEQ)
    sel_rep = (same_batch & same_tok).astype(np.float32)          # (BHN, BN) replicate rows per head
    sel_fold = sel_rep.T.copy()                                   # (BN, BHN) sum heads back
    d = np.arange(EMBED_DIM)[None, :]
    head_mask = (((np.arange(BHN)[:, None] % HN) // SEQ) == (d // HEAD_DIM)).astype(np.float32)
    batch_bias = np.where(same_batch, 0.0, NEG_INF).astype(np.float32)
    return (jnp.asarray(sel_rep, BF16), jnp.asarray(sel_fold, BF16),
            jnp.asarray(head_mask, F32), jnp.asarray(batch_bias, F32))


def _cost(B, operands):
    BN, BHN = B * SEQ, B * NUM_HEADS * SEQ
    mm = lambda m, k, n: 2 * m * k * n
    flops = mm(BN, PATCH_DIM, EMBED_DIM)
    flops += DEPTH * (mm(BN, EMBED_DIM, 3 * EMBED_DIM)
                      + mm(BHN, BN, EMBED_DIM)          # head replicate
                      + mm(BHN, EMBED_DIM, BN)          # scores
                      + mm(BHN, BN, EMBED_DIM)          # context
                      + mm(BN, BHN, EMBED_DIM)          # head fold
                      + mm(BN, EMBED_DIM, EMBED_DIM)    # Wo
                      + mm(BN, EMBED_DIM, MLP_DIM)
                      + mm(BN, MLP_DIM, EMBED_DIM))
    flops += mm(BN, EMBED_DIM, OUT_FEATS)
    transcendentals = DEPTH * (BHN * BN + BN * MLP_DIM + 2 * BN) + BN
    bytes_accessed = (sum(int(a.size) * a.dtype.itemsize for a in operands)
                      + 4 * (BN * OUT_FEATS + BHN * BN))
    return pl.CostEstimate(flops=flops, transcendentals=transcendentals,
                           bytes_accessed=bytes_accessed)


@jax.jit
def mri_vit_forward(x, params):
    B = x.shape[0]
    BN = B * SEQ
    BHN = B * NUM_HEADS * SEQ

    # layout plumbing (wrapper-side, tiny): zero row at each CLS position
    patches = patchify(x).astype(F32)                                           # (B, P, PATCH_DIM)
    tok = jnp.pad(patches, ((0, 0), (1, 0), (0, 0))).reshape(BN, PATCH_DIM)

    # fold conv bias + CLS token + positional embedding into one additive (BN, D) bias
    pos_aug = params["pos"].at[0].add(params["cls"][0])                          # (SEQ, D)
    pe_bias = jnp.concatenate(
        [jnp.zeros((1, EMBED_DIM), F32),
         jnp.broadcast_to(params["pe_b"], (NUM_PATCHES, EMBED_DIM))], axis=0)    # (SEQ, D)
    bias_full = jnp.tile(pos_aug + pe_bias, (B, 1))                              # (BN, D)

    sel_rep, sel_fold, head_mask, batch_bias = _build_masks(B)

    bf = lambda a: a.astype(BF16)   # bf16 MXU operands; f32 accumulation in-kernel
    operands = (bf(tok), bf(params["pe_w"]), bias_full,
                sel_rep, sel_fold, head_mask, batch_bias,
                params["ln1_g"], params["ln1_b"], bf(params["wqkv"]), params["bqkv"],
                bf(params["wo"]), params["bo"], params["ln2_g"], params["ln2_b"],
                bf(params["mlp_w1"]), params["mlp_b1"], bf(params["mlp_w2"]), params["mlp_b2"],
                params["norm_g"], params["norm_b"], bf(params["head_w"]), params["head_b"])

    # Single grid-less pallas_call: all operands are whole-array VMEM blocks.
    out_all, attn_flat = pl.pallas_call(
        fused_vit_kernel,
        out_shape=(jax.ShapeDtypeStruct((BN, OUT_FEATS), F32),
                   jax.ShapeDtypeStruct((BHN, BN), F32)),
        cost_estimate=_cost(B, operands),
    )(*operands)

    # CLS rows + (B, H, SEQ, SEQ) attention view: wrapper-side layout plumbing
    out = out_all.reshape(B, SEQ, OUT_FEATS)[:, 0, :]
    attn5 = attn_flat.reshape(B, NUM_HEADS, SEQ, B, SEQ)
    idx = jnp.arange(B)
    last_attn = attn5[idx, :, :, idx, :]                                         # (B, H, SEQ, SEQ)
    return out, last_attn


# ------------------------------ deterministic init ---------------------------------
def init_params(key):
    def nrm(k, shape, scale=0.02):
        return (scale * jax.random.normal(k, shape)).astype(F32)

    keys = jax.random.split(key, 12)
    params = {
        "pe_w": nrm(keys[0], (PATCH_DIM, EMBED_DIM)),
        "pe_b": nrm(keys[1], (1, EMBED_DIM)),
        "cls": nrm(keys[2], (1, EMBED_DIM)),
        "pos": nrm(keys[3], (SEQ, EMBED_DIM)),
        "norm_g": jnp.ones((1, EMBED_DIM), F32),
        "norm_b": jnp.zeros((1, EMBED_DIM), F32),
        "head_w": nrm(keys[4], (EMBED_DIM, OUT_FEATS)),
        "head_b": nrm(keys[5], (1, OUT_FEATS)),
        # per-layer params stacked along a leading DEPTH axis
        "ln1_g": jnp.ones((DEPTH, 1, EMBED_DIM), F32),
        "ln1_b": jnp.zeros((DEPTH, 1, EMBED_DIM), F32),
        "wqkv": nrm(keys[6], (DEPTH, EMBED_DIM, 3 * EMBED_DIM)),
        "bqkv": nrm(keys[7], (DEPTH, 1, 3 * EMBED_DIM)),
        "wo": nrm(keys[8], (DEPTH, EMBED_DIM, EMBED_DIM)),
        "bo": nrm(keys[9], (DEPTH, 1, EMBED_DIM)),
        "ln2_g": jnp.ones((DEPTH, 1, EMBED_DIM), F32),
        "ln2_b": jnp.zeros((DEPTH, 1, EMBED_DIM), F32),
        "mlp_w1": nrm(keys[10], (DEPTH, EMBED_DIM, MLP_DIM)),
        "mlp_b1": jnp.zeros((DEPTH, 1, MLP_DIM), F32),
        "mlp_w2": nrm(keys[11], (DEPTH, MLP_DIM, EMBED_DIM)),
        "mlp_b2": jnp.zeros((DEPTH, 1, EMBED_DIM), F32),
    }
    return params


# ------------------------------ pure-JAX reference ----------------------------------
def ref_forward(x, params):
    def ln(v, g, b):
        mu = jnp.mean(v, axis=-1, keepdims=True)
        var = jnp.mean((v - mu) ** 2, axis=-1, keepdims=True)
        return (v - mu) / jnp.sqrt(var + LN_EPS) * g + b

    B = x.shape[0]
    patches = patchify(x)                                        # (B, P, PATCH_DIM)
    emb = patches @ params["pe_w"] + params["pe_b"]
    cls = jnp.broadcast_to(params["cls"][None], (B, 1, EMBED_DIM))
    tok = jnp.concatenate([cls, emb], axis=1) + params["pos"][None]

    scale = 1.0 / math.sqrt(HEAD_DIM)
    last_attn = None
    for d in range(DEPTH):
        h = ln(tok, params["ln1_g"][d], params["ln1_b"][d])
        qkv = h @ params["wqkv"][d] + params["bqkv"][d]
        q, k, v = jnp.split(qkv, 3, axis=-1)

        def heads(t):
            return t.reshape(B, SEQ, NUM_HEADS, HEAD_DIM).transpose(0, 2, 1, 3)

        qh, kh, vh = heads(q), heads(k), heads(v)
        scores = jnp.einsum("bhnd,bhmd->bhnm", qh, kh) * scale
        attn = jax.nn.softmax(scores, axis=-1)
        last_attn = attn
        ctx = jnp.einsum("bhnm,bhmd->bhnd", attn, vh)
        ctx = ctx.transpose(0, 2, 1, 3).reshape(B, SEQ, EMBED_DIM)
        tok = tok + ctx @ params["wo"][d] + params["bo"][d]

        h2 = ln(tok, params["ln2_g"][d], params["ln2_b"][d])
        m = jax.nn.gelu(h2 @ params["mlp_w1"][d] + params["mlp_b1"][d],
                        approximate=True) @ params["mlp_w2"][d] + params["mlp_b2"][d]
        tok = tok + m

    y = ln(tok, params["norm_g"], params["norm_b"])[:, 0]
    out = y @ params["head_w"] + params["head_b"]
    return out, last_attn


# ------------------------------------- main ------------------------------------------
if __name__ == "__main__":
    key = jax.random.PRNGKey(0)
    k_x, k_p = jax.random.split(key)
    x = jax.random.normal(k_x, (2, IN_CH, IMG, IMG), dtype=F32)   # (B, 3, H, W)
    params = init_params(k_p)

    out, last_attn = mri_vit_forward(x, params)
    jax.block_until_ready((out, last_attn))

    ref_out, ref_attn = ref_forward(x, params)
    assert out.shape == (2, OUT_FEATS)
    assert last_attn.shape == (2, NUM_HEADS, SEQ, SEQ)
    # bf16 MXU operands + approx softmax reciprocal vs the pure-f32 reference
    assert jnp.allclose(out, ref_out, atol=1e-2, rtol=1e-2), \
        float(jnp.max(jnp.abs(out - ref_out)))
    assert jnp.allclose(last_attn, ref_attn, atol=1e-2, rtol=1e-2), \
        float(jnp.max(jnp.abs(last_attn - ref_attn)))

    print("KERNEL_OK")
</pallas_src>

<mosaic_0001>
module attributes {stable_mosaic.version = 11 : i64} {
  func.func @fused_vit_kernel(%arg0: memref<10x192xbf16, #tpu.memory_space<vmem>>, %arg1: memref<192x32xbf16, #tpu.memory_space<vmem>>, %arg2: memref<10x32xf32, #tpu.memory_space<vmem>>, %arg3: memref<40x10xbf16, #tpu.memory_space<vmem>>, %arg4: memref<10x40xbf16, #tpu.memory_space<vmem>>, %arg5: memref<40x32xf32, #tpu.memory_space<vmem>>, %arg6: memref<40x10xf32, #tpu.memory_space<vmem>>, %arg7: memref<2x1x32xf32, #tpu.memory_space<vmem>>, %arg8: memref<2x1x32xf32, #tpu.memory_space<vmem>>, %arg9: memref<2x32x96xbf16, #tpu.memory_space<vmem>>, %arg10: memref<2x1x96xf32, #tpu.memory_space<vmem>>, %arg11: memref<2x32x32xbf16, #tpu.memory_space<vmem>>, %arg12: memref<2x1x32xf32, #tpu.memory_space<vmem>>, %arg13: memref<2x1x32xf32, #tpu.memory_space<vmem>>, %arg14: memref<2x1x32xf32, #tpu.memory_space<vmem>>, %arg15: memref<2x32x64xbf16, #tpu.memory_space<vmem>>, %arg16: memref<2x1x64xf32, #tpu.memory_space<vmem>>, %arg17: memref<2x64x32xbf16, #tpu.memory_space<vmem>>, %arg18: memref<2x1x32xf32, #tpu.memory_space<vmem>>, %arg19: memref<1x32xf32, #tpu.memory_space<vmem>>, %arg20: memref<1x32xf32, #tpu.memory_space<vmem>>, %arg21: memref<32x16xbf16, #tpu.memory_space<vmem>>, %arg22: memref<1x16xf32, #tpu.memory_space<vmem>>, %arg23: memref<10x16xf32, #tpu.memory_space<vmem>>, %arg24: memref<40x10xf32, #tpu.memory_space<vmem>>) attributes {dimension_semantics = [], scalar_prefetch = 0 : i64, scratch_operands = 0 : i64, tpu.core_type = #tpu.core_type<tc>} {
    %c0 = arith.constant 0 : index
    %c0_0 = arith.constant 0 : index
    %0 = vector.load %arg0[%c0, %c0_0] : memref<10x192xbf16, #tpu.memory_space<vmem>>, vector<10x192xbf16>
    %c0_1 = arith.constant 0 : index
    %c0_2 = arith.constant 0 : index
    %1 = vector.load %arg1[%c0_1, %c0_2] : memref<192x32xbf16, #tpu.memory_space<vmem>>, vector<192x32xbf16>
    %cst = arith.constant dense<0.000000e+00> : vector<10x32xf32>
    %2 = tpu.matmul %0, %1, %cst {dimension_numbers = #tpu.dot_dimension_numbers<[1], [0], [0], [1], [0, 0, 1, 1], [], []>} : vector<10x192xbf16>, vector<192x32xbf16>, vector<10x32xf32> -> vector<10x32xf32>
    %c0_3 = arith.constant 0 : index
    %c0_4 = arith.constant 0 : index
    %3 = vector.load %arg2[%c0_3, %c0_4] : memref<10x32xf32, #tpu.memory_space<vmem>>, vector<10x32xf32>
    %4 = arith.addf %2, %3 : vector<10x32xf32>
    %c0_5 = arith.constant 0 : index
    %c0_6 = arith.constant 0 : index
    %c0_7 = arith.constant 0 : index
    %5 = vector.load %arg7[%c0_5, %c0_6, %c0_7] : memref<2x1x32xf32, #tpu.memory_space<vmem>>, vector<1x1x32xf32>
    %6 = vector.shape_cast %5 : vector<1x1x32xf32> to vector<1x32xf32>
    %c0_8 = arith.constant 0 : index
    %c0_9 = arith.constant 0 : index
    %c0_10 = arith.constant 0 : index
    %7 = vector.load %arg8[%c0_8, %c0_9, %c0_10] : memref<2x1x32xf32, #tpu.memory_space<vmem>>, vector<1x1x32xf32>
    %8 = vector.shape_cast %7 : vector<1x1x32xf32> to vector<1x32xf32>
    %cst_11 = arith.constant dense<0.000000e+00> : vector<10xf32>
    %9 = vector.multi_reduction <add>, %4, %cst_11 [1] : vector<10x32xf32> to vector<10xf32>
    %10 = vector.shape_cast %9 : vector<10xf32> to vector<10x1xf32>
    %cst_12 = arith.constant 3.200000e+01 : f32
    %11 = vector.broadcast %cst_12 : f32 to vector<10x1xf32>
    %12 = arith.divf %10, %11 : vector<10x1xf32>
    %13 = vector.broadcast %12 : vector<10x1xf32> to vector<10x32xf32>
    %14 = arith.subf %4, %13 : vector<10x32xf32>
    %15 = arith.mulf %14, %14 : vector<10x32xf32>
    %cst_13 = arith.constant dense<0.000000e+00> : vector<10xf32>
    %16 = vector.multi_reduction <add>, %15, %cst_13 [1] : vector<10x32xf32> to vector<10xf32>
    %17 = vector.shape_cast %16 : vector<10xf32> to vector<10x1xf32>
    %cst_14 = arith.constant 3.200000e+01 : f32
    %18 = vector.broadcast %cst_14 : f32 to vector<10x1xf32>
    %19 = arith.divf %17, %18 : vector<10x1xf32>
    %20 = vector.broadcast %12 : vector<10x1xf32> to vector<10x32xf32>
    %21 = arith.subf %4, %20 : vector<10x32xf32>
    %cst_15 = arith.constant 9.99999974E-6 : f32
    %22 = vector.broadcast %cst_15 : f32 to vector<10x1xf32>
    %23 = arith.addf %19, %22 : vector<10x1xf32>
    %24 = math.rsqrt %23 : vector<10x1xf32>
    %25 = vector.broadcast %24 : vector<10x1xf32> to vector<10x32xf32>
    %26 = arith.mulf %21, %25 : vector<10x32xf32>
    %27 = vector.broadcast %6 : vector<1x32xf32> to vector<10x32xf32>
    %28 = arith.mulf %26, %27 : vector<10x32xf32>
    %29 = vector.broadcast %8 : vector<1x32xf32> to vector<10x32xf32>
    %30 = arith.addf %28, %29 : vector<10x32xf32>
    %31 = arith.truncf %30 : vector<10x32xf32> to vector<10x32xbf16>
    %c0_16 = arith.constant 0 : index
    %c0_17 = arith.constant 0 : index
    %c0_18 = arith.constant 0 : index
    %32 = vector.load %arg9[%c0_16, %c0_17, %c0_18] : memref<2x32x96xbf16, #tpu.memory_space<vmem>>, vector<1x32x96xbf16>
    %33 = vector.shape_cast %32 : vector<1x32x96xbf16> to vector<32x96xbf16>
    %cst_19 = arith.constant dense<0.000000e+00> : vector<10x96xf32>
    %34 = tpu.matmul %31, %33, %cst_19 {dimension_numbers = #tpu.dot_dimension_numbers<[1], [0], [0], [1], [0, 0, 1, 1], [], []>} : vector<10x32xbf16>, vector<32x96xbf16>, vector<10x96xf32> -> vector<10x96xf32>
    %c0_20 = arith.constant 0 : index
    %c0_21 = arith.constant 0 : index
    %c0_22 = arith.constant 0 : index
    %35 = vector.load %arg10[%c0_20, %c0_21, %c0_22] : memref<2x1x96xf32, #tpu.memory_space<vmem>>, vector<1x1x96xf32>
    %36 = vector.shape_cast %35 : vector<1x1x96xf32> to vector<1x96xf32>
    %37 = vector.broadcast %36 : vector<1x96xf32> to vector<10x96xf32>
    %38 = arith.addf %34, %37 : vector<10x96xf32>
    %39 = vector.extract_strided_slice %38 {offsets = [0, 0], sizes = [10, 32], strides = [1, 1]} : vector<10x96xf32> to vector<10x32xf32>
    %40 = vector.extract_strided_slice %38 {offsets = [0, 32], sizes = [10, 32], strides = [1, 1]} : vector<10x96xf32> to vector<10x32xf32>
    %41 = vector.extract_strided_slice %38 {offsets = [0, 64], sizes = [10, 32], strides = [1, 1]} : vector<10x96xf32> to vector<10x32xf32>
    %c0_23 = arith.constant 0 : index
    %c0_24 = arith.constant 0 : index
    %42 = vector.load %arg3[%c0_23, %c0_24] : memref<40x10xbf16, #tpu.memory_space<vmem>>, vector<40x10xbf16>
    %43 = arith.truncf %39 : vector<10x32xf32> to vector<10x32xbf16>
    %cst_25 = arith.constant dense<0.000000e+00> : vector<40x32xf32>
    %44 = tpu.matmul %42, %43, %cst_25 {dimension_numbers = #tpu.dot_dimension_numbers<[1], [0], [0], [1], [0, 0, 1, 1], [], []>} : vector<40x10xbf16>, vector<10x32xbf16>, vector<40x32xf32> -> vector<40x32xf32>
    %c0_26 = arith.constant 0 : index
    %c0_27 = arith.constant 0 : index
    %45 = vector.load %arg5[%c0_26, %c0_27] : memref<40x32xf32, #tpu.memory_space<vmem>>, vector<40x32xf32>
    %46 = arith.mulf %44, %45 : vector<40x32xf32>
    %47 = arith.truncf %46 : vector<40x32xf32> to vector<40x32xbf16>
    %48 = arith.truncf %40 : vector<10x32xf32> to vector<10x32xbf16>
    %cst_28 = arith.constant dense<0.000000e+00> : vector<40x10xf32>
    %49 = tpu.matmul %47, %48, %cst_28 {dimension_numbers = #tpu.dot_dimension_numbers<[1], [1], [0], [0], [0, 0, 1, 0], [], []>} : vector<40x32xbf16>, vector<10x32xbf16>, vector<40x10xf32> -> vector<40x10xf32>
    %cst_29 = arith.constant 0.353553385 : f32
    %50 = vector.broadcast %cst_29 : f32 to vector<40x10xf32>
    %51 = arith.mulf %49, %50 : vector<40x10xf32>
    %c0_30 = arith.constant 0 : index
    %c0_31 = arith.constant 0 : index
    %52 = vector.load %arg6[%c0_30, %c0_31] : memref<40x10xf32, #tpu.memory_space<vmem>>, vector<40x10xf32>
    %53 = arith.addf %51, %52 : vector<40x10xf32>
    %cst_32 = arith.constant dense<0xFF800000> : vector<40xf32>
    %54 = vector.multi_reduction <maximumf>, %53, %cst_32 [1] : vector<40x10xf32> to vector<40xf32>
    %55 = vector.shape_cast %54 : vector<40xf32> to vector<40x1xf32>
    %56 = vector.broadcast %55 : vector<40x1xf32> to vector<40x10xf32>
    %57 = arith.subf %53, %56 : vector<40x10xf32>
    %58 = math.exp %57 : vector<40x10xf32>
    %cst_33 = arith.constant dense<0.000000e+00> : vector<40xf32>
    %59 = vector.multi_reduction <add>, %58, %cst_33 [1] : vector<40x10xf32> to vector<40xf32>
    %60 = vector.shape_cast %59 : vector<40xf32> to vector<40x1xf32>
    %61 = tpu.reciprocal %60 {approx = true} : vector<40x1xf32> -> vector<40x1xf32>
    %62 = vector.broadcast %61 : vector<40x1xf32> to vector<40x10xf32>
    %63 = arith.mulf %58, %62 : vector<40x10xf32>
    %64 = arith.truncf %63 : vector<40x10xf32> to vector<40x10xbf16>
    %65 = arith.truncf %41 : vector<10x32xf32> to vector<10x32xbf16>
    %cst_34 = arith.constant dense<0.000000e+00> : vector<40x32xf32>
    %66 = tpu.matmul %64, %65, %cst_34 {dimension_numbers = #tpu.dot_dimension_numbers<[1], [0], [0], [1], [0, 0, 1, 1], [], []>} : vector<40x10xbf16>, vector<10x32xbf16>, vector<40x32xf32> -> vector<40x32xf32>
    %c0_35 = arith.constant 0 : index
    %c0_36 = arith.constant 0 : index
    %67 = vector.load %arg5[%c0_35, %c0_36] : memref<40x32xf32, #tpu.memory_space<vmem>>, vector<40x32xf32>
    %68 = arith.mulf %66, %67 : vector<40x32xf32>
    %c0_37 = arith.constant 0 : index
    %c0_38 = arith.constant 0 : index
    %69 = vector.load %arg4[%c0_37, %c0_38] : memref<10x40xbf16, #tpu.memory_space<vmem>>, vector<10x40xbf16>
    %70 = arith.truncf %68 : vector<40x32xf32> to vector<40x32xbf16>
    %cst_39 = arith.constant dense<0.000000e+00> : vector<10x32xf32>
    %71 = tpu.matmul %69, %70, %cst_39 {dimension_numbers = #tpu.dot_dimension_numbers<[1], [0], [0], [1], [0, 0, 1, 1], [], []>} : vector<10x40xbf16>, vector<40x32xbf16>, vector<10x32xf32> -> vector<10x32xf32>
    %72 = arith.truncf %71 : vector<10x32xf32> to vector<10x32xbf16>
    %c0_40 = arith.constant 0 : index
    %c0_41 = arith.constant 0 : index
    %c0_42 = arith.constant 0 : index
    %73 = vector.load %arg11[%c0_40, %c0_41, %c0_42] : memref<2x32x32xbf16, #tpu.memory_space<vmem>>, vector<1x32x32xbf16>
    %74 = vector.shape_cast %73 : vector<1x32x32xbf16> to vector<32x32xbf16>
    %cst_43 = arith.constant dense<0.000000e+00> : vector<10x32xf32>
    %75 = tpu.matmul %72, %74, %cst_43 {dimension_numbers = #tpu.dot_dimension_numbers<[1], [0], [0], [1], [0, 0, 1, 1], [], []>} : vector<10x32xbf16>, vector<32x32xbf16>, vector<10x32xf32> -> vector<10x32xf32>
    %76 = arith.addf %4, %75 : vector<10x32xf32>
    %c0_44 = arith.constant 0 : index
    %c0_45 = arith.constant 0 : index
    %c0_46 = arith.constant 0 : index
    %77 = vector.load %arg12[%c0_44, %c0_45, %c0_46] : memref<2x1x32xf32, #tpu.memory_space<vmem>>, vector<1x1x32xf32>
    %78 = vector.shape_cast %77 : vector<1x1x32xf32> to vector<1x32xf32>
    %79 = vector.broadcast %78 : vector<1x32xf32> to vector<10x32xf32>
    %80 = arith.addf %76, %79 : vector<10x32xf32>
    %c0_47 = arith.constant 0 : index
    %c0_48 = arith.constant 0 : index
    %c0_49 = arith.constant 0 : index
    %81 = vector.load %arg13[%c0_47, %c0_48, %c0_49] : memref<2x1x32xf32, #tpu.memory_space<vmem>>, vector<1x1x32xf32>
    %82 = vector.shape_cast %81 : vector<1x1x32xf32> to vector<1x32xf32>
    %c0_50 = arith.constant 0 : index
    %c0_51 = arith.constant 0 : index
    %c0_52 = arith.constant 0 : index
    %83 = vector.load %arg14[%c0_50, %c0_51, %c0_52] : memref<2x1x32xf32, #tpu.memory_space<vmem>>, vector<1x1x32xf32>
    %84 = vector.shape_cast %83 : vector<1x1x32xf32> to vector<1x32xf32>
    %cst_53 = arith.constant dense<0.000000e+00> : vector<10xf32>
    %85 = vector.multi_reduction <add>, %80, %cst_53 [1] : vector<10x32xf32> to vector<10xf32>
    %86 = vector.shape_cast %85 : vector<10xf32> to vector<10x1xf32>
    %cst_54 = arith.constant 3.200000e+01 : f32
    %87 = vector.broadcast %cst_54 : f32 to vector<10x1xf32>
    %88 = arith.divf %86, %87 : vector<10x1xf32>
    %89 = vector.broadcast %88 : vector<10x1xf32> to vector<10x32xf32>
    %90 = arith.subf %80, %89 : vector<10x32xf32>
    %91 = arith.mulf %90, %90 : vector<10x32xf32>
    %cst_55 = arith.constant dense<0.000000e+00> : vector<10xf32>
    %92 = vector.multi_reduction <add>, %91, %cst_55 [1] : vector<10x32xf32> to vector<10xf32>
    %93 = vector.shape_cast %92 : vector<10xf32> to vector<10x1xf32>
    %cst_56 = arith.constant 3.200000e+01 : f32
    %94 = vector.broadcast %cst_56 : f32 to vector<10x1xf32>
    %95 = arith.divf %93, %94 : vector<10x1xf32>
    %96 = vector.broadcast %88 : vector<10x1xf32> to vector<10x32xf32>
    %97 = arith.subf %80, %96 : vector<10x32xf32>
    %cst_57 = arith.constant 9.99999974E-6 : f32
    %98 = vector.broadcast %cst_57 : f32 to vector<10x1xf32>
    %99 = arith.addf %95, %98 : vector<10x1xf32>
    %100 = math.rsqrt %99 : vector<10x1xf32>
    %101 = vector.broadcast %100 : vector<10x1xf32> to vector<10x32xf32>
    %102 = arith.mulf %97, %101 : vector<10x32xf32>
    %103 = vector.broadcast %82 : vector<1x32xf32> to vector<10x32xf32>
    %104 = arith.mulf %102, %103 : vector<10x32xf32>
    %105 = vector.broadcast %84 : vector<1x32xf32> to vector<10x32xf32>
    %106 = arith.addf %104, %105 : vector<10x32xf32>
    %107 = arith.truncf %106 : vector<10x32xf32> to vector<10x32xbf16>
    %c0_58 = arith.constant 0 : index
    %c0_59 = arith.constant 0 : index
    %c0_60 = arith.constant 0 : index
    %108 = vector.load %arg15[%c0_58, %c0_59, %c0_60] : memref<2x32x64xbf16, #tpu.memory_space<vmem>>, vector<1x32x64xbf16>
    %109 = vector.shape_cast %108 : vector<1x32x64xbf16> to vector<32x64xbf16>
    %cst_61 = arith.constant dense<0.000000e+00> : vector<10x64xf32>
    %110 = tpu.matmul %107, %109, %cst_61 {dimension_numbers = #tpu.dot_dimension_numbers<[1], [0], [0], [1], [0, 0, 1, 1], [], []>} : vector<10x32xbf16>, vector<32x64xbf16>, vector<10x64xf32> -> vector<10x64xf32>
    %c0_62 = arith.constant 0 : index
    %c0_63 = arith.constant 0 : index
    %c0_64 = arith.constant 0 : index
    %111 = vector.load %arg16[%c0_62, %c0_63, %c0_64] : memref<2x1x64xf32, #tpu.memory_space<vmem>>, vector<1x1x64xf32>
    %112 = vector.shape_cast %111 : vector<1x1x64xf32> to vector<1x64xf32>
    %113 = vector.broadcast %112 : vector<1x64xf32> to vector<10x64xf32>
    %114 = arith.addf %110, %113 : vector<10x64xf32>
    %115 = arith.mulf %114, %114 : vector<10x64xf32>
    %116 = arith.mulf %114, %115 : vector<10x64xf32>
    %cst_65 = arith.constant 4.471500e-02 : f32
    %117 = vector.broadcast %cst_65 : f32 to vector<10x64xf32>
    %118 = arith.mulf %117, %116 : vector<10x64xf32>
    %119 = arith.addf %114, %118 : vector<10x64xf32>
    %cst_66 = arith.constant 0.797884583 : f32
    %120 = vector.broadcast %cst_66 : f32 to vector<10x64xf32>
    %121 = arith.mulf %120, %119 : vector<10x64xf32>
    %122 = math.tanh %121 : vector<10x64xf32>
    %cst_67 = arith.constant 1.000000e+00 : f32
    %123 = vector.broadcast %cst_67 : f32 to vector<10x64xf32>
    %124 = arith.addf %123, %122 : vector<10x64xf32>
    %cst_68 = arith.constant 5.000000e-01 : f32
    %125 = vector.broadcast %cst_68 : f32 to vector<10x64xf32>
    %126 = arith.mulf %125, %124 : vector<10x64xf32>
    %127 = arith.mulf %114, %126 : vector<10x64xf32>
    %128 = arith.truncf %127 : vector<10x64xf32> to vector<10x64xbf16>
    %c0_69 = arith.constant 0 : index
    %c0_70 = arith.constant 0 : index
    %c0_71 = arith.constant 0 : index
    %129 = vector.load %arg17[%c0_69, %c0_70, %c0_71] : memref<2x64x32xbf16, #tpu.memory_space<vmem>>, vector<1x64x32xbf16>
    %130 = vector.shape_cast %129 : vector<1x64x32xbf16> to vector<64x32xbf16>
    %cst_72 = arith.constant dense<0.000000e+00> : vector<10x32xf32>
    %131 = tpu.matmul %128, %130, %cst_72 {dimension_numbers = #tpu.dot_dimension_numbers<[1], [0], [0], [1], [0, 0, 1, 1], [], []>} : vector<10x64xbf16>, vector<64x32xbf16>, vector<10x32xf32> -> vector<10x32xf32>
    %132 = arith.addf %80, %131 : vector<10x32xf32>
    %c0_73 = arith.constant 0 : index
    %c0_74 = arith.constant 0 : index
    %c0_75 = arith.constant 0 : index
    %133 = vector.load %arg18[%c0_73, %c0_74, %c0_75] : memref<2x1x32xf32, #tpu.memory_space<vmem>>, vector<1x1x32xf32>
    %134 = vector.shape_cast %133 : vector<1x1x32xf32> to vector<1x32xf32>
    %135 = vector.broadcast %134 : vector<1x32xf32> to vector<10x32xf32>
    %136 = arith.addf %132, %135 : vector<10x32xf32>
    %c1 = arith.constant 1 : index
    %c0_76 = arith.constant 0 : index
    %c0_77 = arith.constant 0 : index
    %137 = vector.load %arg7[%c1, %c0_76, %c0_77] : memref<2x1x32xf32, #tpu.memory_space<vmem>>, vector<1x1x32xf32>
    %138 = vector.shape_cast %137 : vector<1x1x32xf32> to vector<1x32xf32>
    %c1_78 = arith.constant 1 : index
    %c0_79 = arith.constant 0 : index
    %c0_80 = arith.constant 0 : index
    %139 = vector.load %arg8[%c1_78, %c0_79, %c0_80] : memref<2x1x32xf32, #tpu.memory_space<vmem>>, vector<1x1x32xf32>
    %140 = vector.shape_cast %139 : vector<1x1x32xf32> to vector<1x32xf32>
    %cst_81 = arith.constant dense<0.000000e+00> : vector<10xf32>
    %141 = vector.multi_reduction <add>, %136, %cst_81 [1] : vector<10x32xf32> to vector<10xf32>
    %142 = vector.shape_cast %141 : vector<10xf32> to vector<10x1xf32>
    %cst_82 = arith.constant 3.200000e+01 : f32
    %143 = vector.broadcast %cst_82 : f32 to vector<10x1xf32>
    %144 = arith.divf %142, %143 : vector<10x1xf32>
    %145 = vector.broadcast %144 : vector<10x1xf32> to vector<10x32xf32>
    %146 = arith.subf %136, %145 : vector<10x32xf32>
    %147 = arith.mulf %146, %146 : vector<10x32xf32>
    %cst_83 = arith.constant dense<0.000000e+00> : vector<10xf32>
    %148 = vector.multi_reduction <add>, %147, %cst_83 [1] : vector<10x32xf32> to vector<10xf32>
    %149 = vector.shape_cast %148 : vector<10xf32> to vector<10x1xf32>
    %cst_84 = arith.constant 3.200000e+01 : f32
    %150 = vector.broadcast %cst_84 : f32 to vector<10x1xf32>
    %151 = arith.divf %149, %150 : vector<10x1xf32>
    %152 = vector.broadcast %144 : vector<10x1xf32> to vector<10x32xf32>
    %153 = arith.subf %136, %152 : vector<10x32xf32>
    %cst_85 = arith.constant 9.99999974E-6 : f32
    %154 = vector.broadcast %cst_85 : f32 to vector<10x1xf32>
    %155 = arith.addf %151, %154 : vector<10x1xf32>
    %156 = math.rsqrt %155 : vector<10x1xf32>
    %157 = vector.broadcast %156 : vector<10x1xf32> to vector<10x32xf32>
    %158 = arith.mulf %153, %157 : vector<10x32xf32>
    %159 = vector.broadcast %138 : vector<1x32xf32> to vector<10x32xf32>
    %160 = arith.mulf %158, %159 : vector<10x32xf32>
    %161 = vector.broadcast %140 : vector<1x32xf32> to vector<10x32xf32>
    %162 = arith.addf %160, %161 : vector<10x32xf32>
    %163 = arith.truncf %162 : vector<10x32xf32> to vector<10x32xbf16>
    %c1_86 = arith.constant 1 : index
    %c0_87 = arith.constant 0 : index
    %c0_88 = arith.constant 0 : index
    %164 = vector.load %arg9[%c1_86, %c0_87, %c0_88] : memref<2x32x96xbf16, #tpu.memory_space<vmem>>, vector<1x32x96xbf16>
    %165 = vector.shape_cast %164 : vector<1x32x96xbf16> to vector<32x96xbf16>
    %cst_89 = arith.constant dense<0.000000e+00> : vector<10x96xf32>
    %166 = tpu.matmul %163, %165, %cst_89 {dimension_numbers = #tpu.dot_dimension_numbers<[1], [0], [0], [1], [0, 0, 1, 1], [], []>} : vector<10x32xbf16>, vector<32x96xbf16>, vector<10x96xf32> -> vector<10x96xf32>
    %c1_90 = arith.constant 1 : index
    %c0_91 = arith.constant 0 : index
    %c0_92 = arith.constant 0 : index
    %167 = vector.load %arg10[%c1_90, %c0_91, %c0_92] : memref<2x1x96xf32, #tpu.memory_space<vmem>>, vector<1x1x96xf32>
    %168 = vector.shape_cast %167 : vector<1x1x96xf32> to vector<1x96xf32>
    %169 = vector.broadcast %168 : vector<1x96xf32> to vector<10x96xf32>
    %170 = arith.addf %166, %169 : vector<10x96xf32>
    %171 = vector.extract_strided_slice %170 {offsets = [0, 0], sizes = [10, 32], strides = [1, 1]} : vector<10x96xf32> to vector<10x32xf32>
    %172 = vector.extract_strided_slice %170 {offsets = [0, 32], sizes = [10, 32], strides = [1, 1]} : vector<10x96xf32> to vector<10x32xf32>
    %173 = vector.extract_strided_slice %170 {offsets = [0, 64], sizes = [10, 32], strides = [1, 1]} : vector<10x96xf32> to vector<10x32xf32>
    %c0_93 = arith.constant 0 : index
    %c0_94 = arith.constant 0 : index
    %174 = vector.load %arg3[%c0_93, %c0_94] : memref<40x10xbf16, #tpu.memory_space<vmem>>, vector<40x10xbf16>
    %175 = arith.truncf %171 : vector<10x32xf32> to vector<10x32xbf16>
    %cst_95 = arith.constant dense<0.000000e+00> : vector<40x32xf32>
    %176 = tpu.matmul %174, %175, %cst_95 {dimension_numbers = #tpu.dot_dimension_numbers<[1], [0], [0], [1], [0, 0, 1, 1], [], []>} : vector<40x10xbf16>, vector<10x32xbf16>, vector<40x32xf32> -> vector<40x32xf32>
    %c0_96 = arith.constant 0 : index
    %c0_97 = arith.constant 0 : index
    %177 = vector.load %arg5[%c0_96, %c0_97] : memref<40x32xf32, #tpu.memory_space<vmem>>, vector<40x32xf32>
    %178 = arith.mulf %176, %177 : vector<40x32xf32>
    %179 = arith.truncf %178 : vector<40x32xf32> to vector<40x32xbf16>
    %180 = arith.truncf %172 : vector<10x32xf32> to vector<10x32xbf16>
    %cst_98 = arith.constant dense<0.000000e+00> : vector<40x10xf32>
    %181 = tpu.matmul %179, %180, %cst_98 {dimension_numbers = #tpu.dot_dimension_numbers<[1], [1], [0], [0], [0, 0, 1, 0], [], []>} : vector<40x32xbf16>, vector<10x32xbf16>, vector<40x10xf32> -> vector<40x10xf32>
    %cst_99 = arith.constant 0.353553385 : f32
    %182 = vector.broadcast %cst_99 : f32 to vector<40x10xf32>
    %183 = arith.mulf %181, %182 : vector<40x10xf32>
    %c0_100 = arith.constant 0 : index
    %c0_101 = arith.constant 0 : index
    %184 = vector.load %arg6[%c0_100, %c0_101] : memref<40x10xf32, #tpu.memory_space<vmem>>, vector<40x10xf32>
    %185 = arith.addf %183, %184 : vector<40x10xf32>
    %cst_102 = arith.constant dense<0xFF800000> : vector<40xf32>
    %186 = vector.multi_reduction <maximumf>, %185, %cst_102 [1] : vector<40x10xf32> to vector<40xf32>
    %187 = vector.shape_cast %186 : vector<40xf32> to vector<40x1xf32>
    %188 = vector.broadcast %187 : vector<40x1xf32> to vector<40x10xf32>
    %189 = arith.subf %185, %188 : vector<40x10xf32>
    %190 = math.exp %189 : vector<40x10xf32>
    %cst_103 = arith.constant dense<0.000000e+00> : vector<40xf32>
    %191 = vector.multi_reduction <add>, %190, %cst_103 [1] : vector<40x10xf32> to vector<40xf32>
    %192 = vector.shape_cast %191 : vector<40xf32> to vector<40x1xf32>
    %193 = tpu.reciprocal %192 {approx = true} : vector<40x1xf32> -> vector<40x1xf32>
    %194 = vector.broadcast %193 : vector<40x1xf32> to vector<40x10xf32>
    %195 = arith.mulf %190, %194 : vector<40x10xf32>
    %196 = arith.truncf %195 : vector<40x10xf32> to vector<40x10xbf16>
    %197 = arith.truncf %173 : vector<10x32xf32> to vector<10x32xbf16>
    %cst_104 = arith.constant dense<0.000000e+00> : vector<40x32xf32>
    %198 = tpu.matmul %196, %197, %cst_104 {dimension_numbers = #tpu.dot_dimension_numbers<[1], [0], [0], [1], [0, 0, 1, 1], [], []>} : vector<40x10xbf16>, vector<10x32xbf16>, vector<40x32xf32> -> vector<40x32xf32>
    %c0_105 = arith.constant 0 : index
    %c0_106 = arith.constant 0 : index
    %199 = vector.load %arg5[%c0_105, %c0_106] : memref<40x32xf32, #tpu.memory_space<vmem>>, vector<40x32xf32>
    %200 = arith.mulf %198, %199 : vector<40x32xf32>
    %c0_107 = arith.constant 0 : index
    %c0_108 = arith.constant 0 : index
    %201 = vector.load %arg4[%c0_107, %c0_108] : memref<10x40xbf16, #tpu.memory_space<vmem>>, vector<10x40xbf16>
    %202 = arith.truncf %200 : vector<40x32xf32> to vector<40x32xbf16>
    %cst_109 = arith.constant dense<0.000000e+00> : vector<10x32xf32>
    %203 = tpu.matmul %201, %202, %cst_109 {dimension_numbers = #tpu.dot_dimension_numbers<[1], [0], [0], [1], [0, 0, 1, 1], [], []>} : vector<10x40xbf16>, vector<40x32xbf16>, vector<10x32xf32> -> vector<10x32xf32>
    %204 = arith.truncf %203 : vector<10x32xf32> to vector<10x32xbf16>
    %c1_110 = arith.constant 1 : index
    %c0_111 = arith.constant 0 : index
    %c0_112 = arith.constant 0 : index
    %205 = vector.load %arg11[%c1_110, %c0_111, %c0_112] : memref<2x32x32xbf16, #tpu.memory_space<vmem>>, vector<1x32x32xbf16>
    %206 = vector.shape_cast %205 : vector<1x32x32xbf16> to vector<32x32xbf16>
    %cst_113 = arith.constant dense<0.000000e+00> : vector<10x32xf32>
    %207 = tpu.matmul %204, %206, %cst_113 {dimension_numbers = #tpu.dot_dimension_numbers<[1], [0], [0], [1], [0, 0, 1, 1], [], []>} : vector<10x32xbf16>, vector<32x32xbf16>, vector<10x32xf32> -> vector<10x32xf32>
    %208 = arith.addf %136, %207 : vector<10x32xf32>
    %c1_114 = arith.constant 1 : index
    %c0_115 = arith.constant 0 : index
    %c0_116 = arith.constant 0 : index
    %209 = vector.load %arg12[%c1_114, %c0_115, %c0_116] : memref<2x1x32xf32, #tpu.memory_space<vmem>>, vector<1x1x32xf32>
    %210 = vector.shape_cast %209 : vector<1x1x32xf32> to vector<1x32xf32>
    %211 = vector.broadcast %210 : vector<1x32xf32> to vector<10x32xf32>
    %212 = arith.addf %208, %211 : vector<10x32xf32>
    %c1_117 = arith.constant 1 : index
    %c0_118 = arith.constant 0 : index
    %c0_119 = arith.constant 0 : index
    %213 = vector.load %arg13[%c1_117, %c0_118, %c0_119] : memref<2x1x32xf32, #tpu.memory_space<vmem>>, vector<1x1x32xf32>
    %214 = vector.shape_cast %213 : vector<1x1x32xf32> to vector<1x32xf32>
    %c1_120 = arith.constant 1 : index
    %c0_121 = arith.constant 0 : index
    %c0_122 = arith.constant 0 : index
    %215 = vector.load %arg14[%c1_120, %c0_121, %c0_122] : memref<2x1x32xf32, #tpu.memory_space<vmem>>, vector<1x1x32xf32>
    %216 = vector.shape_cast %215 : vector<1x1x32xf32> to vector<1x32xf32>
    %cst_123 = arith.constant dense<0.000000e+00> : vector<10xf32>
    %217 = vector.multi_reduction <add>, %212, %cst_123 [1] : vector<10x32xf32> to vector<10xf32>
    %218 = vector.shape_cast %217 : vector<10xf32> to vector<10x1xf32>
    %cst_124 = arith.constant 3.200000e+01 : f32
    %219 = vector.broadcast %cst_124 : f32 to vector<10x1xf32>
    %220 = arith.divf %218, %219 : vector<10x1xf32>
    %221 = vector.broadcast %220 : vector<10x1xf32> to vector<10x32xf32>
    %222 = arith.subf %212, %221 : vector<10x32xf32>
    %223 = arith.mulf %222, %222 : vector<10x32xf32>
    %cst_125 = arith.constant dense<0.000000e+00> : vector<10xf32>
    %224 = vector.multi_reduction <add>, %223, %cst_125 [1] : vector<10x32xf32> to vector<10xf32>
    %225 = vector.shape_cast %224 : vector<10xf32> to vector<10x1xf32>
    %cst_126 = arith.constant 3.200000e+01 : f32
    %226 = vector.broadcast %cst_126 : f32 to vector<10x1xf32>
    %227 = arith.divf %225, %226 : vector<10x1xf32>
    %228 = vector.broadcast %220 : vector<10x1xf32> to vector<10x32xf32>
    %229 = arith.subf %212, %228 : vector<10x32xf32>
    %cst_127 = arith.constant 9.99999974E-6 : f32
    %230 = vector.broadcast %cst_127 : f32 to vector<10x1xf32>
    %231 = arith.addf %227, %230 : vector<10x1xf32>
    %232 = math.rsqrt %231 : vector<10x1xf32>
    %233 = vector.broadcast %232 : vector<10x1xf32> to vector<10x32xf32>
    %234 = arith.mulf %229, %233 : vector<10x32xf32>
    %235 = vector.broadcast %214 : vector<1x32xf32> to vector<10x32xf32>
    %236 = arith.mulf %234, %235 : vector<10x32xf32>
    %237 = vector.broadcast %216 : vector<1x32xf32> to vector<10x32xf32>
    %238 = arith.addf %236, %237 : vector<10x32xf32>
    %239 = arith.truncf %238 : vector<10x32xf32> to vector<10x32xbf16>
    %c1_128 = arith.constant 1 : index
    %c0_129 = arith.constant 0 : index
    %c0_130 = arith.constant 0 : index
    %240 = vector.load %arg15[%c1_128, %c0_129, %c0_130] : memref<2x32x64xbf16, #tpu.memory_space<vmem>>, vector<1x32x64xbf16>
    %241 = vector.shape_cast %240 : vector<1x32x64xbf16> to vector<32x64xbf16>
    %cst_131 = arith.constant dense<0.000000e+00> : vector<10x64xf32>
    %242 = tpu.matmul %239, %241, %cst_131 {dimension_numbers = #tpu.dot_dimension_numbers<[1], [0], [0], [1], [0, 0, 1, 1], [], []>} : vector<10x32xbf16>, vector<32x64xbf16>, vector<10x64xf32> -> vector<10x64xf32>
    %c1_132 = arith.constant 1 : index
    %c0_133 = arith.constant 0 : index
    %c0_134 = arith.constant 0 : index
    %243 = vector.load %arg16[%c1_132, %c0_133, %c0_134] : memref<2x1x64xf32, #tpu.memory_space<vmem>>, vector<1x1x64xf32>
    %244 = vector.shape_cast %243 : vector<1x1x64xf32> to vector<1x64xf32>
    %245 = vector.broadcast %244 : vector<1x64xf32> to vector<10x64xf32>
    %246 = arith.addf %242, %245 : vector<10x64xf32>
    %247 = arith.mulf %246, %246 : vector<10x64xf32>
    %248 = arith.mulf %246, %247 : vector<10x64xf32>
    %cst_135 = arith.constant 4.471500e-02 : f32
    %249 = vector.broadcast %cst_135 : f32 to vector<10x64xf32>
    %250 = arith.mulf %249, %248 : vector<10x64xf32>
    %251 = arith.addf %246, %250 : vector<10x64xf32>
    %cst_136 = arith.constant 0.797884583 : f32
    %252 = vector.broadcast %cst_136 : f32 to vector<10x64xf32>
    %253 = arith.mulf %252, %251 : vector<10x64xf32>
    %254 = math.tanh %253 : vector<10x64xf32>
    %cst_137 = arith.constant 1.000000e+00 : f32
    %255 = vector.broadcast %cst_137 : f32 to vector<10x64xf32>
    %256 = arith.addf %255, %254 : vector<10x64xf32>
    %cst_138 = arith.constant 5.000000e-01 : f32
    %257 = vector.broadcast %cst_138 : f32 to vector<10x64xf32>
    %258 = arith.mulf %257, %256 : vector<10x64xf32>
    %259 = arith.mulf %246, %258 : vector<10x64xf32>
    %260 = arith.truncf %259 : vector<10x64xf32> to vector<10x64xbf16>
    %c1_139 = arith.constant 1 : index
    %c0_140 = arith.constant 0 : index
    %c0_141 = arith.constant 0 : index
    %261 = vector.load %arg17[%c1_139, %c0_140, %c0_141] : memref<2x64x32xbf16, #tpu.memory_space<vmem>>, vector<1x64x32xbf16>
    %262 = vector.shape_cast %261 : vector<1x64x32xbf16> to vector<64x32xbf16>
    %cst_142 = arith.constant dense<0.000000e+00> : vector<10x32xf32>
    %263 = tpu.matmul %260, %262, %cst_142 {dimension_numbers = #tpu.dot_dimension_numbers<[1], [0], [0], [1], [0, 0, 1, 1], [], []>} : vector<10x64xbf16>, vector<64x32xbf16>, vector<10x32xf32> -> vector<10x32xf32>
    %264 = arith.addf %212, %263 : vector<10x32xf32>
    %c1_143 = arith.constant 1 : index
    %c0_144 = arith.constant 0 : index
    %c0_145 = arith.constant 0 : index
    %265 = vector.load %arg18[%c1_143, %c0_144, %c0_145] : memref<2x1x32xf32, #tpu.memory_space<vmem>>, vector<1x1x32xf32>
    %266 = vector.shape_cast %265 : vector<1x1x32xf32> to vector<1x32xf32>
    %267 = vector.broadcast %266 : vector<1x32xf32> to vector<10x32xf32>
    %268 = arith.addf %264, %267 : vector<10x32xf32>
    %c0_146 = arith.constant 0 : index
    %c0_147 = arith.constant 0 : index
    %269 = vector.load %arg24[%c0_146, %c0_147] : memref<40x10xf32, #tpu.memory_space<vmem>>, vector<40x10xf32>
    tpu.vector_store %arg24[%c0_146, %c0_147], %195 {strides = array<i32>} : memref<40x10xf32, #tpu.memory_space<vmem>>, vector<40x10xf32>,
    %c0_148 = arith.constant 0 : index
    %c0_149 = arith.constant 0 : index
    %270 = vector.load %arg19[%c0_148, %c0_149] : memref<1x32xf32, #tpu.memory_space<vmem>>, vector<1x32xf32>
    %c0_150 = arith.constant 0 : index
    %c0_151 = arith.constant 0 : index
    %271 = vector.load %arg20[%c0_150, %c0_151] : memref<1x32xf32, #tpu.memory_space<vmem>>, vector<1x32xf32>
    %cst_152 = arith.constant dense<0.000000e+00> : vector<10xf32>
    %272 = vector.multi_reduction <add>, %268, %cst_152 [1] : vector<10x32xf32> to vector<10xf32>
    %273 = vector.shape_cast %272 : vector<10xf32> to vector<10x1xf32>
    %cst_153 = arith.constant 3.200000e+01 : f32
    %274 = vector.broadcast %cst_153 : f32 to vector<10x1xf32>
    %275 = arith.divf %273, %274 : vector<10x1xf32>
    %276 = vector.broadcast %275 : vector<10x1xf32> to vector<10x32xf32>
    %277 = arith.subf %268, %276 : vector<10x32xf32>
    %278 = arith.mulf %277, %277 : vector<10x32xf32>
    %cst_154 = arith.constant dense<0.000000e+00> : vector<10xf32>
    %279 = vector.multi_reduction <add>, %278, %cst_154 [1] : vector<10x32xf32> to vector<10xf32>
    %280 = vector.shape_cast %279 : vector<10xf32> to vector<10x1xf32>
    %cst_155 = arith.constant 3.200000e+01 : f32
    %281 = vector.broadcast %cst_155 : f32 to vector<10x1xf32>
    %282 = arith.divf %280, %281 : vector<10x1xf32>
    %283 = vector.broadcast %275 : vector<10x1xf32> to vector<10x32xf32>
    %284 = arith.subf %268, %283 : vector<10x32xf32>
    %cst_156 = arith.constant 9.99999974E-6 : f32
    %285 = vector.broadcast %cst_156 : f32 to vector<10x1xf32>
    %286 = arith.addf %282, %285 : vector<10x1xf32>
    %287 = math.rsqrt %286 : vector<10x1xf32>
    %288 = vector.broadcast %287 : vector<10x1xf32> to vector<10x32xf32>
    %289 = arith.mulf %284, %288 : vector<10x32xf32>
    %290 = vector.broadcast %270 : vector<1x32xf32> to vector<10x32xf32>
    %291 = arith.mulf %289, %290 : vector<10x32xf32>
    %292 = vector.broadcast %271 : vector<1x32xf32> to vector<10x32xf32>
    %293 = arith.addf %291, %292 : vector<10x32xf32>
    %294 = arith.truncf %293 : vector<10x32xf32> to vector<10x32xbf16>
    %c0_157 = arith.constant 0 : index
    %c0_158 = arith.constant 0 : index
    %295 = vector.load %arg21[%c0_157, %c0_158] : memref<32x16xbf16, #tpu.memory_space<vmem>>, vector<32x16xbf16>
    %cst_159 = arith.constant dense<0.000000e+00> : vector<10x16xf32>
    %296 = tpu.matmul %294, %295, %cst_159 {dimension_numbers = #tpu.dot_dimension_numbers<[1], [0], [0], [1], [0, 0, 1, 1], [], []>} : vector<10x32xbf16>, vector<32x16xbf16>, vector<10x16xf32> -> vector<10x16xf32>
    %c0_160 = arith.constant 0 : index
    %c0_161 = arith.constant 0 : index
    %297 = vector.load %arg22[%c0_160, %c0_161] : memref<1x16xf32, #tpu.memory_space<vmem>>, vector<1x16xf32>
    %298 = vector.broadcast %297 : vector<1x16xf32> to vector<10x16xf32>
    %299 = arith.addf %296, %298 : vector<10x16xf32>
    %c0_162 = arith.constant 0 : index
    %c0_163 = arith.constant 0 : index
    %300 = vector.load %arg23[%c0_162, %c0_163] : memref<10x16xf32, #tpu.memory_space<vmem>>, vector<10x16xf32>
    tpu.vector_store %arg23[%c0_162, %c0_163], %299 {strides = array<i32>} : memref<10x16xf32, #tpu.memory_space<vmem>>, vector<10x16xf32>,
    return
  }
}

</mosaic_0001>

<bundles_post_ra>
// kernel: tile.9
= control target key start
LH: loop header
LB: loop body
LE: loop exit
PB: predicated region body
PF: predicated region fallthrough
CT: control target
= control target key end

     0   :  { %vm3_vm0 = vcmask 261120   ;;  %s34_s0 = inlined_call_operand.vmem [shape: f32[2,5,32], index: 0, kind: input, shape index: {}]   ;;  %s35_s1 = inlined_call_operand.vmem [shape: f32[10,32], index: 1, kind: output, shape index: {}]  }
   0x1   :  { %v2_v0 = vld [vmem:[%s34_s0] sm:$0x1f]   ;;  %v10_v1 = vld [vmem:[%s34_s0 + $0x8] sm:$0x1f]  }
   0x2   :  { %4 = vst.msk [vmem:[%s35_s1] sm:$0x1f] %vm3_vm0, %v2_v0   ;;  %11 = vst.msk [vmem:[%s35_s1 + $0x5] sm:$0x1f] %vm3_vm0, %v10_v1  }

// kernel: mri_vit_forward.1
= control target key start
LH: loop header
LB: loop body
LE: loop exit
PB: predicated region body
PF: predicated region fallthrough
CT: control target
= control target key end

     0   :  { %v2371_v0 = vmov 0   ;;  %vm186_vm0 = vcmask 523264   ;;  %vm233_vm1 = vcmask 261120   ;;  %vm237_vm2 = vcmask 254976   ;;  %s3040_s1 = inlined_call_operand.vmem [shape: bf16[192,32], index: 1, kind: input, shape index: {}]   ;;  %s3041_s0 = inlined_call_operand.vmem [shape: bf16[10,192], index: 0, kind: input, shape index: {}]   ;;  %s3042_s2 = inlined_call_operand.vmem [shape: f32[10,32], index: 2, kind: input, shape index: {}]   ;;  %s3043_s9 = inlined_call_operand.vmem [shape: bf16[2,32,96], index: 9, kind: input, shape index: {}]   ;;  %s3044_s7 = inlined_call_operand.vmem [shape: f32[2,1,32], index: 7, kind: input, shape index: {}]   ;;  %s3045_s8 = inlined_call_operand.vmem [shape: f32[2,1,32], index: 8, kind: input, shape index: {}]   ;;  %s3046_s3 = inlined_call_operand.vmem [shape: bf16[40,10], index: 3, kind: input, shape index: {}]   ;;  %s3047_s10 = inlined_call_operand.vmem [shape: f32[2,1,96], index: 10, kind: input, shape index: {}]   ;;  %s3048_s5 = inlined_call_operand.vmem [shape: f32[40,32], index: 5, kind: input, shape index: {}]   ;;  %s3049_s6 = inlined_call_operand.vmem [shape: f32[40,10], index: 6, kind: input, shape index: {}]   ;;  %s3050_s4 = inlined_call_operand.vmem [shape: bf16[10,40], index: 4, kind: input, shape index: {}]   ;;  %s3051_s11 = inlined_call_operand.vmem [shape: bf16[2,32,32], index: 11, kind: input, shape index: {}]   ;;  %s3052_s12 = inlined_call_operand.vmem [shape: f32[2,1,32], index: 12, kind: input, shape index: {}]   ;;  %s3053_s15 = inlined_call_operand.vmem [shape: bf16[2,32,64], index: 15, kind: input, shape index: {}]   ;;  %s3054_s13 = inlined_call_operand.vmem [shape: f32[2,1,32], index: 13, kind: input, shape index: {}]   ;;  %s3055_s14 = inlined_call_operand.vmem [shape: f32[2,1,32], index: 14, kind: input, shape index: {}]   ;;  %s3056_s17 = inlined_call_operand.vmem [shape: bf16[2,64,32], index: 17, kind: input, shape index: {}]   ;;  %s3057_s16 = inlined_call_operand.vmem [shape: f32[2,1,64], index: 16, kind: input, shape index: {}]   ;;  %s3058_s18 = inlined_call_operand.vmem [shape: f32[2,1,32], index: 18, kind: input, shape index: {}]   ;;  %s3059_s24 = inlined_call_operand.vmem [shape: f32[40,10], index: 24, kind: output, shape index: {1}]   ;;  %s3060_s21 = inlined_call_operand.vmem [shape: bf16[32,16], index: 21, kind: input, shape index: {}]   ;;  %s3061_s19 = inlined_call_operand.vmem [shape: f32[1,32], index: 19, kind: input, shape index: {}]   ;;  %s3062_s20 = inlined_call_operand.vmem [shape: f32[1,32], index: 20, kind: input, shape index: {}]   ;;  %s3063_s22 = inlined_call_operand.vmem [shape: f32[1,16], index: 22, kind: input, shape index: {}]   ;;  %s3064_s23 = inlined_call_operand.vmem [shape: f32[10,16], index: 23, kind: output, shape index: {0}]  }
   0x1   :  { %3074 = sst [smem:[#allocation2_spill]] %s3040_s1  ;;  %190 = vmatprep.subr.bf16.mxu0 %v2371_v0  ;;  %v2372_v35 = vmov 0.0   ;;  %vm2373_vm3 = vmmov 0   ;;  %vm375_vm4 = vcmask 1044480   ;;  %s2374_s1 = smov 96   ;;  %vm365_vm5 = vcmask 80896  }
   0x2   :  { %3075 = sst [smem:[#allocation3_spill]] %s3041_s0  ;;  %2068 = vmatprep.subr.bf16.mxu1 %v2372_v35  ;;  %2072 = vmatprep.mubr.msk.bf16.mxu1 %vm2373_vm3, %v2372_v35  ;;  %vm681_vm6 = vcmask 1043456   ;;  %vm677_vm7 = vcmask 326656   ;;  %vm1876_vm8 = vcmask 130048   ;;  %vm1878_vm9 = vcmask 123904  }
   0x3   :  { %3076 = sst [smem:[#allocation4_spill]] %s3042_s2 }
   0x4   :  { %3077 = sst [smem:[#allocation5_spill]] %s3043_s9 }
   0x5   :  { %3078 = sst [smem:[#allocation6_spill]] %s3044_s7 }
   0x6   :  { %3079 = sst [smem:[#allocation7_spill]] %s3045_s8 }
   0x7   :  { %3080 = sst [smem:[#allocation8_spill]] %s3046_s3 }
   0x8   :  { %3081 = sst [smem:[#allocation9_spill]] %s3047_s10 }
   0x9   :  { %3082 = sst [smem:[#allocation10_spill]] %s3048_s5 }
   0xa   :  { %s3083_s27 = sld [smem:[#allocation2_spill]] }
   0xb   :  { %s3084_s9 = sld [smem:[#allocation3_spill]] }
   0xc   :  { %s3085_s2 = sld [smem:[#allocation4_spill]] }
   0xd   :  { %s3086_s10 = sld [smem:[#allocation5_spill]] }
   0xe   :  { %s3087_s0 = sld [smem:[#allocation6_spill]] }
   0xf   :  { %s3088_s28 = sld [smem:[#allocation7_spill]] }
  0x10   :  { %v2257_v1 = vld [vmem:[%s3083_s27 + $0x38] sm:$0xff]   ;;  %v2258_v2 = vld [vmem:[%s3083_s27 + $0x30] sm:$0xff]   ;;  %v2259_v3 = vld [vmem:[%s3083_s27 + $0x28] sm:$0xff]   ;;  %s3089_s29 = sld [smem:[#allocation9_spill]] }
  0x11   :  { %191 = vmatpush1.bf16.msra.mxu0 %v2257_v1  ;;  %v2260_v4 = vld [vmem:[%s3083_s27 + $0x20] sm:$0xff]   ;;  %v2261_v6 = vld [vmem:[%s3083_s27 + $0x18] sm:$0xff]   ;;  %v2262_v7 = vld [vmem:[%s3083_s27 + $0x10] sm:$0xff]   ;;  %s3090_s30 = sld [smem:[#allocation8_spill]] }
  0x12   :  { %192 = vmatprep.subr.bf16.mxu0 %v2371_v0  ;;  %v2271_v5 = vld [vmem:[%s3084_s9 + $0x4] ss:$8 sps:$4 sm:$0x1f]   ;;  %v2265_v10 = vld [vmem:[%s3083_s27 + $0x58] sm:$0xff]   ;;  %v2266_v11 = vld [vmem:[%s3083_s27 + $0x50] sm:$0xff]  }
  0x13   :  { %1902 = vmatprep.mubr.msk.bf16.mxu0 %vm186_vm0, %v2271_v5  ;;  %v2263_v8 = vld [vmem:[%s3083_s27 + $0x8] sm:$0xff]   ;;  %v2264_v9 = vld [vmem:[%s3083_s27] sm:$0xff]  }
  0x14   :  { %v2267_v12 = vld [vmem:[%s3083_s27 + $0x48] sm:$0xff]   ;;  %v2268_v13 = vld [vmem:[%s3083_s27 + $0x40] sm:$0xff]  }
  0x15   :  { %193 = vmatpush1.bf16.msra.mxu0 %v2258_v2  ;;  %v2269_v14 = vld [vmem:[%s3084_s9] ss:$8 sps:$4 sm:$0x1f]  }
  0x16   :  { %194 = vmatprep.subr.bf16.mxu0 %v2371_v0  ;;  %v103_v15 = vld [vmem:[%s3085_s2] sm:$0xff]  ;;  %v104_v19 = vld [vmem:[%s3085_s2 + $0x8] sm:$0x3]  ;;  %s3091_s2 = sld [smem:[#allocation10_spill]] }
  0x17   :  { %v2272_v36 = vld [vmem:[%s3086_s10 + $0x8] sm:$0xff]   ;;  %v2273_v37 = vld [vmem:[%s3086_s10] sm:$0xff]   ;;  %v2616_v2 = vld [vmem:[%s3090_s30 + $0x10] ss:$0 sps:$4 sm:$0xff]  }
  0x18   :  { %2069 = vmatpush3.bf16.msra.mxu1 %v2272_v36  ;;  %v1903_v46 = vld [vmem:[%s3087_s0] ss:$0 sm:$0xff]  ;;  %v2607_v1 = vld [vmem:[%s3090_s30 + $0x8] sm:$0xff]  }
  0x19   :  { %195 = vmatpush1.bf16.msra.mxu0 %v2259_v3  ;;  %2070 = vmatprep.subr.bf16.mxu1 %v2372_v35  ;;  %v1904_v50 = vld [vmem:[%s3088_s28] ss:$0 sm:$0xff] }
  0x1a   :  { %196 = vmatprep.subr.bf16.mxu0 %v2371_v0  ;;  %v1905_v56 = vld [vmem:[%s3089_s29] ss:$0 sm:$0xff] }
  0x1c   :  { %2071 = vmatpush3.bf16.msra.mxu1 %v2273_v37 }
  0x1d   :  { %197 = vmatpush1.bf16.msra.mxu0 %v2260_v4  ;;  %2076 = vmatprep.subr.bf16.mxu1 %v2372_v35 }
  0x1e   :  { %198 = vmatprep.subr.bf16.mxu0 %v2371_v0 }
  0x21   :  { %199 = vmatpush1.bf16.msra.mxu0 %v2261_v6  ;;  %v2627_v6 = vld [vmem:[%s3091_s2] sm:$0xff] }
  0x22   :  { %200 = vmatprep.subr.bf16.mxu0 %v2371_v0 }
  0x25   :  { %201 = vmatpush1.bf16.msra.mxu0 %v2262_v7 }
  0x26   :  { %202 = vmatprep.subr.bf16.mxu0 %v2371_v0 }
  0x29   :  { %203 = vmatpush1.bf16.msra.mxu0 %v2263_v8  ;;  %v2632_v8 = vld [vmem:[%s3091_s2 + $0x8] sm:$0xff] }
  0x2a   :  { %204 = vmatprep.subr.bf16.mxu0 %v2371_v0 }
  0x2d   :  { %205 = vmatpush1.bf16.msra.mxu0 %v2264_v9 }
  0x2e   :  { %214 = vmatprep.subr.bf16.mxu0 %v2371_v0 }
  0x31   :  { %215 = vmatpush2.bf16.msra.mxu0 %v2265_v10 }
  0x32   :  { %216 = vmatprep.subr.bf16.mxu0 %v2371_v0 }
  0x35   :  { %217 = vmatpush2.bf16.msra.mxu0 %v2266_v11 }
  0x36   :  { %218 = vmatprep.subr.bf16.mxu0 %v2371_v0 }
  0x39   :  { %219 = vmatpush2.bf16.msra.mxu0 %v2267_v12 }
  0x3a   :  { %220 = vmatprep.subr.bf16.mxu0 %v2371_v0  ;;  %v2597_v0 = vld [vmem:[%s3090_s30] sm:$0xff]  }
  0x3d   :  { %221 = vmatpush2.bf16.msra.mxu0 %v2268_v13 }
  0x3e   :  { %2104 = vmatprep.subr.bf16.mxu0 %v2372_v35 }
  0x40   :  { %223 = vmatmul.mubr.bf16.vlgmr.msra.gmra.mxu0 %v2269_v14 }
  0x41   :  { %2106 = vmatprep.mubr.msk.bf16.mxu0 %vm2373_vm3, %v2372_v35 }
 0x100   :  { %v224_v16 = vpop.f32.mrf.mxu0 }
 0x101   :  { %v2547_v17 = vadd.f32 %v224_v16, %v103_v15  ;;  %v2640_v15 = vld [vmem:[%s3091_s2 + $0x10] sm:$0xff] }
 0x102   :  { %v226_v18 = vpop.f32.mrf.mxu0 }
 0x103   :  { %v234_v20 = vsel %vm233_vm1, %v2547_v17, 0.0  ;;  %v2645_v18 = vld [vmem:[%s3091_s2 + $0x18] sm:$0xff] }
 0x104   :  { %v227_v21 = vpop.f32.mrf.mxu0  ;;  %235 = vadd.xlane.f32.xlu0 %v234_v20 }
 0x105   :  { %v2554_v22 = vadd.f32 %v227_v21, %v104_v19 }
 0x106   :  { %v229_v23 = vpop.f32.mrf.mxu0 }
 0x107   :  { %v238_v24 = vsel %vm237_vm2, %v2554_v22, 0.0 }
 0x108   :  { %239 = vadd.xlane.f32.xlu0 %v238_v24  ;;  %v2654_v24 = vld [vmem:[%s3091_s2 + $0x20] sm:$0xff] }
 0x18d   :  { %v236_v25 = vpop.xlane.xlu0 %235 }
 0x18e   :  { %v242_v26 = vmul.f32 0.03125, %v236_v25 }
 0x190   :  { %v244_v27 = vsub.f32 %v2547_v17, %v242_v26 }
 0x191   :  { %v240_v28 = vpop.xlane.xlu0 %239 }
 0x192   :  { %v243_v29 = vmul.f32 0.03125, %v240_v28  ;;  %v246_v30 = vmul.f32 %v244_v27, %v244_v27 }
 0x194   :  { %v245_v31 = vsub.f32 %v2554_v22, %v243_v29  ;;  %v248_v32 = vsel %vm233_vm1, %v246_v30, 0.0 }
 0x195   :  { %249 = vadd.xlane.f32.xlu1 %v248_v32 }
 0x196   :  { %v247_v33 = vmul.f32 %v245_v31, %v245_v31 }
 0x198   :  { %v251_v34 = vsel %vm237_vm2, %v247_v33, 0.0  ;;  %v2666_v33 = vld [vmem:[%s3049_s6] sm:$0xff] }
 0x199   :  { %252 = vadd.xlane.f32.xlu1 %v251_v34 }
 0x21e   :  { %v250_v38 = vpop.xlane.xlu1 %249 }
 0x21f   :  { %v254_v39 = vmul.f32 0.03125, %v250_v38 }
 0x221   :  { %v256_v40 = vadd.f32 1e-05, %v254_v39  ;;  %v2672_v39 = vld [vmem:[%s3049_s6 + $0x8] sm:$0xff] }
 0x222   :  { %v253_v41 = vpop.xlane.xlu1 %252 }
 0x223   :  { %2298 = vrsqrt.f32 %v256_v40  ;;  %v255_v42 = vmul.f32 0.03125, %v253_v41 }
 0x225   :  { %v257_v43 = vadd.f32 1e-05, %v255_v42 }
 0x227   :  { %2300 = vrsqrt.f32 %v257_v43 }
 0x230   :  { %v2299_v44 = vpop.eup %2298 }
 0x231   :  { %v260_v45 = vmul.f32 %v2299_v44, %v244_v27 }
 0x233   :  { %v268_v49 = vmul.f32 %v1903_v46, %v260_v45  ;;  %v2679_v45 = vld [vmem:[%s3049_s6 + $0x10] sm:$0xff] }
 0x234   :  { %v2301_v47 = vpop.eup %2300 }
 0x235   :  { %v261_v48 = vmul.f32 %v2301_v47, %v245_v31  ;;  %v276_v52 = vadd.f32 %v1904_v50, %v268_v49 }
 0x237   :  { %v269_v51 = vmul.f32 %v1903_v46, %v261_v48 }
 0x239   :  { %v277_v53 = vadd.f32 %v1904_v50, %v269_v51  ;;  %v2686_v51 = vld [vmem:[%s3049_s6 + $0x18] sm:$0xff] }
 0x23b   :  { %v278_v54 = vpack.c.bf16 %v277_v53, %v276_v52 }
 0x23d   :  { %2073 = vmatmul.mubr.msk.bf16.vlgmr.msra.gmra.mxu1 %vm233_vm1, %v278_v54 }
 0x23e   :  { %2078 = vmatprep.mubr.msk.bf16.mxu1 %vm2373_vm3, %v2372_v35 }
 0x2fd   :  { %v339_v55 = vpop.f32.mrf.mxu1 }
 0x2fe   :  { %v340_v59 = vadd.f32 %v1905_v56, %v339_v55 }
 0x2ff   :  { %v2074_v57 = vpop.f32.mrf.mxu1 }
 0x300   :  { %v2693_v57 = vld [vmem:[%s3049_s6 + $0x20] sm:$0xff]  ;;  %s2375_s6 = smov 64  }
 0x301   :  { %v342_v58 = vpop.f32.mrf.mxu1 }
 0x302   :  { %v343_v60 = vadd.f32 %v1905_v56, %v342_v58 }
 0x303   :  { %v2075_v61 = vpop.f32.mrf.mxu1 }
 0x304   :  { %v2588_v62 = vpack.c.bf16 %v343_v60, %v340_v59 }
 0x306   :  { %449 = vrot.lane.b32.xlu0 %v2588_v62, %s2374_s1  ;;  %v377_v63 = vsel %vm375_vm4, %v2588_v62, 0 }
 0x307   :  { %2077 = vmatpush3.bf16.msra.mxu1 %v377_v63 }
 0x308   :  { %2090 = vmatprep.subr.bf16.mxu1 %v2372_v35 }
 0x30a   :  { %2079 = vmatmul.mubr.msk.bf16.vlgmr.msra.gmra.mxu1 %vm365_vm5, %v2597_v0 }
 0x30b   :  { %2082 = vmatprep.mubr.msk.bf16.mxu1 %vm2373_vm3, %v2372_v35 }
 0x312   :  { %2083 = vmatmul.mubr.msk.bf16.gmra.mxu1 %vm365_vm5, %v2607_v1 }
 0x313   :  { %2086 = vmatprep.mubr.msk.bf16.mxu1 %vm2373_vm3, %v2372_v35 }
 0x31a   :  { %2087 = vmatmul.mubr.msk.bf16.gmra.mxu1 %vm365_vm5, %v2616_v2 }
 0x31b   :  { %2092 = vmatprep.mubr.msk.bf16.mxu1 %vm2373_vm3, %v2372_v35 }
 0x378   :  { %v450_v3 = vpop.permute.xlu0 %449 }
 0x379   :  { %v461_v4 = vsel %vm233_vm1, %v450_v3, 0 }
 0x37a   :  { %2091 = vmatpush3.bf16.xpose.msra.mxu1 %v461_v4 }
 0x37b   :  { %2118 = vmatprep.subr.bf16.mxu1 %v2372_v35 }
 0x3ca   :  { %v413_v5 = vpop.f32.mrf.mxu1 }
 0x3cb   :  { %v440_v10 = vmul.f32 %v2627_v6, %v413_v5 }
 0x3cc   :  { %v2080_v7 = vpop.f32.mrf.mxu1 }
 0x3ce   :  { %v416_v9 = vpop.f32.mrf.mxu1 }
 0x3cf   :  { %v441_v11 = vmul.f32 %v2632_v8, %v416_v9 }
 0x3d0   :  { %v2081_v12 = vpop.f32.mrf.mxu1 }
 0x3d1   :  { %v445_v13 = vpack.c.bf16 %v441_v11, %v440_v10 }
 0x3d2   :  { %v421_v14 = vpop.f32.mrf.mxu1 }
 0x3d3   :  { %2093 = vmatmul.mubr.msk.bf16.vlgmr.msra.gmra.mxu1 %vm233_vm1, %v445_v13  ;;  %v442_v20 = vmul.f32 %v2640_v15, %v421_v14 }
 0x3d4   :  { %v2084_v16 = vpop.f32.mrf.mxu1  ;;  %2096 = vmatprep.mubr.msk.bf16.mxu1 %vm2373_vm3, %v2372_v35 }
 0x3d6   :  { %v424_v19 = vpop.f32.mrf.mxu1 }
 0x3d7   :  { %v443_v21 = vmul.f32 %v2645_v18, %v424_v19 }
 0x3d8   :  { %v2085_v23 = vpop.f32.mrf.mxu1 }
 0x3d9   :  { %v446_v25 = vpack.c.bf16 %v443_v21, %v442_v20 }
 0x3da   :  { %v429_v26 = vpop.f32.mrf.mxu1 }
 0x3db   :  { %v444_v27 = vmul.f32 %v2654_v24, %v429_v26  ;;  %2097 = vmatmul.mubr.msk.bf16.gmra.mxu1 %vm233_vm1, %v446_v25 }
 0x3dc   :  { %v2088_v28 = vpop.f32.mrf.mxu1  ;;  %2100 = vmatprep.mubr.msk.bf16.mxu1 %vm2373_vm3, %v2372_v35 }
 0x3dd   :  { %v447_v30 = vpack.c.bf16 %v444_v27, %v444_v27 }
 0x3de   :  { %v432_v29 = vpop.f32.mrf.mxu1 }
 0x3e0   :  { %v2089_v31 = vpop.f32.mrf.mxu1 }
 0x3e3   :  { %2101 = vmatmul.mubr.msk.bf16.gmra.mxu1 %vm233_vm1, %v447_v30 }
 0x3e4   :  { %2124 = vmatprep.mubr.msk.bf16.mxu1 %vm2373_vm3, %v2372_v35 }
 0x493   :  { %v497_v32 = vpop.f32.mrf.mxu1 }
 0x494   :  { %v519_v34 = vmul.f32 0.35355338, %v497_v32 }
 0x495   :  { %v2094_v36 = vpop.f32.mrf.mxu1 }
 0x496   :  { %v529_v37 = vadd.f32 %v2666_v33, %v519_v34 }
 0x497   :  { %v500_v38 = vpop.f32.mrf.mxu1 }
 0x498   :  { %v520_v40 = vmul.f32 0.35355338, %v500_v38  ;;  %v534_v41 = vsel %vm365_vm5, %v529_v37, -inf }
 0x499   :  { %535 = vmax.xlane.f32.xlu1 %v534_v41  ;;  %v2095_v42 = vpop.f32.mrf.mxu1 }
 0x49a   :  { %v530_v43 = vadd.f32 %v2672_v39, %v520_v40 }
 0x49b   :  { %v505_v44 = vpop.f32.mrf.mxu1 }
 0x49c   :  { %v521_v46 = vmul.f32 0.35355338, %v505_v44  ;;  %v537_v47 = vsel %vm365_vm5, %v530_v43, -inf }
 0x49d   :  { %538 = vmax.xlane.f32.xlu1 %v537_v47  ;;  %v2098_v48 = vpop.f32.mrf.mxu1 }
 0x49e   :  { %v531_v49 = vadd.f32 %v2679_v45, %v521_v46 }
 0x49f   :  { %v508_v50 = vpop.f32.mrf.mxu1 }
 0x4a0   :  { %v522_v52 = vmul.f32 0.35355338, %v508_v50  ;;  %v540_v53 = vsel %vm365_vm5, %v531_v49, -inf }
 0x4a1   :  { %541 = vmax.xlane.f32.xlu1 %v540_v53  ;;  %v2099_v54 = vpop.f32.mrf.mxu1 }
 0x4a2   :  { %v532_v55 = vadd.f32 %v2686_v51, %v522_v52 }
 0x4a3   :  { %v513_v56 = vpop.f32.mrf.mxu1 }
 0x4a4   :  { %v523_v58 = vmul.f32 0.35355338, %v513_v56  ;;  %v543_v59 = vsel %vm365_vm5, %v532_v55, -inf }
 0x4a5   :  { %544 = vmax.xlane.f32.xlu1 %v543_v59  ;;  %v2102_v60 = vpop.f32.mrf.mxu1 }
 0x4a6   :  { %v533_v61 = vadd.f32 %v2693_v57, %v523_v58 }
 0x4a7   :  { %v516_v63 = vpop.f32.mrf.mxu1 }
 0x4a8   :  { %v546_v3 = vsel %vm365_vm5, %v533_v61, -inf }
 0x4a9   :  { %547 = vmax.xlane.f32.xlu1 %v546_v3  ;;  %v2103_v4 = vpop.f32.mrf.mxu1 }
 0x522   :  { %v536_v5 = vpop.xlane.xlu1 %535 }
 0x523   :  { %v549_v7 = vsub.f32 %v529_v37, %v536_v5 }
 0x525   :  { %v554_v9 = vmul.f32 1.442695, %v549_v7 }
 0x526   :  { %v539_v10 = vpop.xlane.xlu1 %538 }
 0x527   :  { %2302 = vpow2.f32 %v554_v9  ;;  %v550_v11 = vsub.f32 %v530_v43, %v539_v10 }
 0x529   :  { %v556_v12 = vmul.f32 1.442695, %v550_v11 }
 0x52a   :  { %v542_v13 = vpop.xlane.xlu1 %541 }
 0x52b   :  { %2304 = vpow2.f32 %v556_v12  ;;  %v551_v14 = vsub.f32 %v531_v49, %v542_v13 }
 0x52d   :  { %v558_v16 = vmul.f32 1.442695, %v551_v14 }
 0x52e   :  { %v545_v19 = vpop.xlane.xlu1 %544 }
 0x52f   :  { %2306 = vpow2.f32 %v558_v16  ;;  %v552_v20 = vsub.f32 %v532_v55, %v545_v19 }
 0x531   :  { %v560_v21 = vmul.f32 1.442695, %v552_v20 }
 0x532   :  { %v548_v23 = vpop.xlane.xlu1 %547 }
 0x533   :  { %2308 = vpow2.f32 %v560_v21  ;;  %v553_v25 = vsub.f32 %v533_v61, %v548_v23 }
 0x534   :  { %v2303_v26 = vpop.eup %2302 }
 0x535   :  { %v562_v27 = vmul.f32 1.442695, %v553_v25  ;;  %v564_v28 = vsel %vm365_vm5, %v2303_v26, 0.0 }
 0x536   :  { %565 = vadd.xlane.f32.xlu1 %v564_v28 }
 0x537   :  { %2310 = vpow2.f32 %v562_v27 }
 0x538   :  { %v2305_v29 = vpop.eup %2304 }
 0x539   :  { %v567_v30 = vsel %vm365_vm5, %v2305_v29, 0.0 }
 0x53a   :  { %568 = vadd.xlane.f32.xlu0 %v567_v30  ;;  %v2727_v30 = vld [vmem:[%s3050_s4] sm:$0x1f]  }
 0x53c   :  { %v2307_v31 = vpop.eup %2306 }
 0x53d   :  { %v570_v32 = vsel %vm365_vm5, %v2307_v31, 0.0 }
 0x53e   :  { %571 = vadd.xlane.f32.xlu1 %v570_v32  ;;  %v2279_v32 = vld [vmem:[%s3051_s11] sm:$0xff]  }
 0x540   :  { %v2309_v34 = vpop.eup %2308 }
 0x541   :  { %v573_v36 = vsel %vm365_vm5, %v2309_v34, 0.0 }
 0x542   :  { %574 = vadd.xlane.f32.xlu1 %v573_v36 }
 0x544   :  { %v2311_v37 = vpop.eup %2310 }
 0x545   :  { %v576_v38 = vsel %vm365_vm5, %v2311_v37, 0.0 }
 0x546   :  { %577 = vadd.xlane.f32.xlu1 %v576_v38 }
 0x557   :  { %592 = vrot.lane.b32.xlu1 %v2588_v62, %s2375_s6 }
 0x5bf   :  { %v566_v40 = vpop.xlane.xlu1 %565 }
 0x5c0   :  { %2312 = vrcp.f32 %v566_v40 }
 0x5c3   :  { %v569_v41 = vpop.xlane.xlu0 %568 }
 0x5c4   :  { %2314 = vrcp.f32 %v569_v41 }
 0x5c7   :  { %v572_v42 = vpop.xlane.xlu1 %571 }
 0x5c8   :  { %2316 = vrcp.f32 %v572_v42  ;;  %v1926_v42 = vld [vmem:[%s3052_s12] ss:$0 sm:$0xff] }
 0x5cb   :  { %v575_v43 = vpop.xlane.xlu1 %574 }
 0x5cc   :  { %2318 = vrcp.f32 %v575_v43 }
 0x5cd   :  { %v2313_v46 = vpop.eup %2312 }
 0x5ce   :  { %v584_v52 = vmul.f32 %v2313_v46, %v2303_v26 }
 0x5cf   :  { %v578_v44 = vpop.xlane.xlu1 %577 }
 0x5d0   :  { %2320 = vrcp.f32 %v578_v44 }
 0x5d1   :  { %v2315_v47 = vpop.eup %2314 }
 0x5d2   :  { %v585_v48 = vmul.f32 %v2315_v47, %v2305_v29 }
 0x5d3   :  { %v593_v49 = vpop.permute.xlu1 %592 }
 0x5d4   :  { %v604_v50 = vsel %vm375_vm4, %v593_v49, 0  ;;  %v589_v53 = vpack.c.bf16 %v585_v48, %v584_v52 }
 0x5d5   :  { %2105 = vmatpush3.bf16.msra.mxu0 %v604_v50  ;;  %v2317_v62 = vpop.eup %2316 }
 0x5d6   :  { %2136 = vmatprep.subr.bf16.mxu0 %v2372_v35  ;;  %v586_v56 = vmul.f32 %v2317_v62, %v2307_v31  ;;  %v2278_v31 = vld [vmem:[%s3051_s11 + $0x8] sm:$0xff]  }
 0x5d8   :  { %2107 = vmatmul.mubr.msk.bf16.vlgmr.msra.gmra.mxu0 %vm365_vm5, %v589_v53 }
 0x5d9   :  { %v2319_v54 = vpop.eup %2318  ;;  %2110 = vmatprep.mubr.msk.bf16.mxu0 %vm2373_vm3, %v2372_v35 }
 0x5da   :  { %v587_v55 = vmul.f32 %v2319_v54, %v2309_v34 }
 0x5dc   :  { %v590_v58 = vpack.c.bf16 %v587_v55, %v586_v56 }
 0x5dd   :  { %v2321_v59 = vpop.eup %2320 }
 0x5de   :  { %v588_v60 = vmul.f32 %v2321_v59, %v2311_v37 }
 0x5e0   :  { %2111 = vmatmul.mubr.msk.bf16.gmra.mxu0 %vm365_vm5, %v590_v58  ;;  %v591_v61 = vpack.c.bf16 %v588_v60, %v588_v60 }
 0x5e1   :  { %2114 = vmatprep.mubr.msk.bf16.mxu0 %vm2373_vm3, %v2372_v35 }
 0x5e8   :  { %2115 = vmatmul.mubr.msk.bf16.gmra.mxu0 %vm365_vm5, %v591_v61 }
 0x5e9   :  { %2140 = vmatprep.mubr.msk.bf16.mxu0 %vm2373_vm3, %v2372_v35 }
 0x698   :  { %v640_v63 = vpop.f32.mrf.mxu0 }
 0x699   :  { %v662_v28 = vmul.f32 %v640_v63, %v2627_v6  ;;  %v2280_v63 = vld [vmem:[%s3053_s15 + $0x8] sm:$0xff]  }
 0x69a   :  { %v2108_v3 = vpop.f32.mrf.mxu0  ;;  %2137 = vmatpush3.bf16.msra.mxu0 %v2280_v63 }
 0x69b   :  { %2138 = vmatprep.subr.bf16.mxu0 %v2372_v35  ;;  %v2281_v3 = vld [vmem:[%s3053_s15] sm:$0xff]  }
 0x69c   :  { %v643_v4 = vpop.f32.mrf.mxu0 }
 0x69d   :  { %v663_v26 = vmul.f32 %v643_v4, %v2632_v8 }
 0x69e   :  { %v2109_v5 = vpop.f32.mrf.mxu0  ;;  %2139 = vmatpush3.bf16.msra.mxu0 %v2281_v3 }
 0x69f   :  { %v669_v29 = vpack.c.bf16 %v663_v26, %v662_v28  ;;  %2156 = vmatprep.subr.bf16.mxu0 %v2372_v35  ;;  %v2282_v28 = vld [vmem:[%s3056_s17 + $0x18] sm:$0xff]  }
 0x6a0   :  { %v648_v7 = vpop.f32.mrf.mxu0 }
 0x6a1   :  { %v664_v23 = vmul.f32 %v648_v7, %v2640_v15 }
 0x6a2   :  { %v2112_v9 = vpop.f32.mrf.mxu0 }
 0x6a4   :  { %v651_v10 = vpop.f32.mrf.mxu0 }
 0x6a5   :  { %v665_v19 = vmul.f32 %v651_v10, %v2645_v18 }
 0x6a6   :  { %v2113_v11 = vpop.f32.mrf.mxu0 }
 0x6a7   :  { %v670_v27 = vpack.c.bf16 %v665_v19, %v664_v23 }
 0x6a8   :  { %v656_v12 = vpop.f32.mrf.mxu0 }
 0x6a9   :  { %v666_v13 = vmul.f32 %v656_v12, %v2654_v24 }
 0x6aa   :  { %v2116_v14 = vpop.f32.mrf.mxu0 }
 0x6ab   :  { %v671_v16 = vpack.c.bf16 %v666_v13, %v666_v13  ;;  %v1927_v14 = vld [vmem:[%s3054_s13] ss:$0 sm:$0xff] }
 0x6ac   :  { %v659_v20 = vpop.f32.mrf.mxu0 }
 0x6ad   :  { %v683_v21 = vsel %vm681_vm6, %v671_v16, 0 }
 0x6ae   :  { %v2117_v25 = vpop.f32.mrf.mxu0  ;;  %2119 = vmatpush3.bf16.msra.mxu1 %v683_v21  ;;  %v1928_v21 = vld [vmem:[%s3055_s14] ss:$0 sm:$0xff] }
 0x6af   :  { %2120 = vmatprep.subr.bf16.mxu1 %v2372_v35 }
 0x6b2   :  { %2121 = vmatpush3.bf16.msra.mxu1 %v670_v27 }
 0x6b3   :  { %2122 = vmatprep.subr.bf16.mxu1 %v2372_v35 }
 0x6b6   :  { %2123 = vmatpush3.bf16.msra.mxu1 %v669_v29  ;;  %v2283_v29 = vld [vmem:[%s3056_s17 + $0x10] sm:$0xff]  }
 0x6b7   :  { %2128 = vmatprep.subr.bf16.mxu1 %v2372_v35 }
 0x6b9   :  { %2125 = vmatmul.mubr.msk.bf16.vlgmr.msra.gmra.mxu1 %vm677_vm7, %v2727_v30 }
 0x6ba   :  { %2132 = vmatprep.mubr.msk.bf16.mxu1 %vm2373_vm3, %v2372_v35  ;;  %2129 = vmatpush3.bf16.msra.mxu1 %v2278_v31  ;;  %v2284_v31 = vld [vmem:[%s3056_s17 + $0x8] sm:$0xff]  }
 0x6bb   :  { %2130 = vmatprep.subr.bf16.mxu1 %v2372_v35 }
 0x6be   :  { %2131 = vmatpush3.bf16.msra.mxu1 %v2279_v32  ;;  %v2285_v32 = vld [vmem:[%s3056_s17] sm:$0xff]  }
 0x6bf   :  { %2144 = vmatprep.subr.bf16.mxu1 %v2372_v35 }
 0x779   :  { %v719_v34 = vpop.f32.mrf.mxu1 }
 0x77b   :  { %v2126_v36 = vpop.f32.mrf.mxu1 }
 0x77d   :  { %v722_v37 = vpop.f32.mrf.mxu1 }
 0x77e   :  { %v726_v38 = vpack.c.bf16 %v722_v37, %v719_v34  ;;  %v1929_v34 = vld [vmem:[%s3057_s16] ss:$0 sm:$0xff] }
 0x77f   :  { %v2127_v40 = vpop.f32.mrf.mxu1 }
 0x780   :  { %2133 = vmatmul.mubr.msk.bf16.vlgmr.msra.gmra.mxu1 %vm233_vm1, %v726_v38 }
 0x781   :  { %2152 = vmatprep.mubr.msk.bf16.mxu1 %vm2373_vm3, %v2372_v35  ;;  %2145 = vmatpush3.bf16.msra.mxu1 %v2282_v28 }
 0x782   :  { %2146 = vmatprep.subr.bf16.mxu1 %v2372_v35 }
 0x785   :  { %2147 = vmatpush3.bf16.msra.mxu1 %v2283_v29 }
 0x786   :  { %2148 = vmatprep.subr.bf16.mxu1 %v2372_v35 }
 0x789   :  { %2149 = vmatpush3.bf16.msra.mxu1 %v2284_v31  ;;  %v2286_v31 = vld [vmem:[%s3086_s10 + $0x18] sm:$0xff]  }
 0x78a   :  { %2150 = vmatprep.subr.bf16.mxu1 %v2372_v35 }
 0x78d   :  { %2151 = vmatpush3.bf16.msra.mxu1 %v2285_v32  ;;  %v2287_v32 = vld [vmem:[%s3086_s10 + $0x10] sm:$0xff]  }
 0x78e   :  { %2178 = vmatprep.subr.bf16.mxu1 %v2372_v35 }
 0x840   :  { %v780_v41 = vpop.f32.mrf.mxu1 }
 0x841   :  { %v787_v43 = vadd.f32 %v780_v41, %v2547_v17 }
 0x842   :  { %v2134_v44 = vpop.f32.mrf.mxu1 }
 0x843   :  { %v2749_v46 = vadd.f32 %v1926_v42, %v787_v43 }
 0x844   :  { %v783_v47 = vpop.f32.mrf.mxu1 }
 0x845   :  { %v788_v48 = vadd.f32 %v783_v47, %v2554_v22  ;;  %v800_v49 = vsel %vm233_vm1, %v2749_v46, 0.0 }
 0x846   :  { %801 = vadd.xlane.f32.xlu0 %v800_v49  ;;  %v2135_v50 = vpop.f32.mrf.mxu1 }
 0x847   :  { %v2754_v52 = vadd.f32 %v1926_v42, %v788_v48 }
 0x849   :  { %v803_v53 = vsel %vm237_vm2, %v2754_v52, 0.0 }
 0x84a   :  { %804 = vadd.xlane.f32.xlu1 %v803_v53 }
 0x8cf   :  { %v802_v62 = vpop.xlane.xlu0 %801 }
 0x8d0   :  { %v806_v54 = vmul.f32 0.03125, %v802_v62 }
 0x8d2   :  { %v808_v17 = vsub.f32 %v2749_v46, %v806_v54 }
 0x8d3   :  { %v805_v55 = vpop.xlane.xlu1 %804 }
 0x8d4   :  { %v807_v56 = vmul.f32 0.03125, %v805_v55  ;;  %v810_v58 = vmul.f32 %v808_v17, %v808_v17 }
 0x8d6   :  { %v809_v22 = vsub.f32 %v2754_v52, %v807_v56  ;;  %v812_v59 = vsel %vm233_vm1, %v810_v58, 0.0 }
 0x8d7   :  { %813 = vadd.xlane.f32.xlu0 %v812_v59 }
 0x8d8   :  { %v811_v60 = vmul.f32 %v809_v22, %v809_v22 }
 0x8da   :  { %v815_v61 = vsel %vm237_vm2, %v811_v60, 0.0 }
 0x8db   :  { %816 = vadd.xlane.f32.xlu0 %v815_v61 }
 0x960   :  { %v814_v4 = vpop.xlane.xlu0 %813 }
 0x961   :  { %v818_v5 = vmul.f32 0.03125, %v814_v4 }
 0x963   :  { %v820_v7 = vadd.f32 1e-05, %v818_v5  ;;  %v1938_v5 = vld [vmem:[%s3058_s18] ss:$0 sm:$0xff] }
 0x964   :  { %v817_v9 = vpop.xlane.xlu0 %816 }
 0x965   :  { %2322 = vrsqrt.f32 %v820_v7  ;;  %v819_v10 = vmul.f32 0.03125, %v817_v9 }
 0x967   :  { %v821_v11 = vadd.f32 1e-05, %v819_v10 }
 0x969   :  { %2324 = vrsqrt.f32 %v821_v11 }
 0x972   :  { %v2323_v12 = vpop.eup %2322 }
 0x973   :  { %v824_v13 = vmul.f32 %v2323_v12, %v808_v17 }
 0x975   :  { %v832_v19 = vmul.f32 %v1927_v14, %v824_v13 }
 0x976   :  { %v2325_v16 = vpop.eup %2324 }
 0x977   :  { %v825_v20 = vmul.f32 %v2325_v16, %v809_v22  ;;  %v840_v25 = vadd.f32 %v1928_v21, %v832_v19 }
 0x979   :  { %v833_v23 = vmul.f32 %v1927_v14, %v825_v20 }
 0x97b   :  { %v841_v26 = vadd.f32 %v1928_v21, %v833_v23 }
 0x97d   :  { %v842_v27 = vpack.c.bf16 %v841_v26, %v840_v25 }
 0x97f   :  { %2141 = vmatmul.mubr.msk.bf16.vlgmr.msra.gmra.mxu0 %vm233_vm1, %v842_v27 }
 0x980   :  { %2160 = vmatprep.mubr.msk.bf16.mxu0 %vm2373_vm3, %v2372_v35  ;;  %2157 = vmatpush3.bf16.msra.mxu0 %v2286_v31 }
 0x981   :  { %2158 = vmatprep.subr.bf16.mxu0 %v2372_v35 }
 0x984   :  { %2159 = vmatpush3.bf16.msra.mxu0 %v2287_v32 }
 0x985   :  { %2164 = vmatprep.subr.bf16.mxu0 %v2372_v35 }
 0xa3f   :  { %v903_v36 = vpop.f32.mrf.mxu0 }
 0xa40   :  { %v904_v37 = vadd.f32 %v1929_v34, %v903_v36 }
 0xa41   :  { %v2142_v38 = vpop.f32.mrf.mxu0 }
 0xa42   :  { %v910_v40 = vmul.f32 %v904_v37, %v904_v37 }
 0xa43   :  { %v906_v41 = vpop.f32.mrf.mxu0 }
 0xa44   :  { %v912_v42 = vmul.f32 %v910_v40, %v904_v37  ;;  %v907_v43 = vadd.f32 %v1929_v34, %v906_v41 }
 0xa45   :  { %v2143_v44 = vpop.f32.mrf.mxu0 }
 0xa46   :  { %v914_v47 = vmul.f32 0.044715, %v912_v42  ;;  %v911_v48 = vmul.f32 %v907_v43, %v907_v43 }
 0xa48   :  { %v916_v49 = vadd.f32 %v914_v47, %v904_v37  ;;  %v913_v50 = vmul.f32 %v911_v48, %v907_v43  ;;  %v1942_v47 = vld [vmem:[%s3088_s28 + $0x1] ss:$0 sm:$0xff] }
 0xa4a   :  { %v918_v53 = vmul.f32 0.7978846, %v916_v49  ;;  %v915_v62 = vmul.f32 0.044715, %v913_v50 }
 0xa4c   :  { %2326 = vtanh.f32 %v918_v53  ;;  %v917_v54 = vadd.f32 %v915_v62, %v907_v43 }
 0xa4e   :  { %v919_v17 = vmul.f32 0.7978846, %v917_v54 }
 0xa50   :  { %2328 = vtanh.f32 %v919_v17 }
 0xa59   :  { %v2327_v55 = vpop.eup %2326 }
 0xa5a   :  { %v922_v56 = vadd.f32 1.0, %v2327_v55 }
 0xa5c   :  { %v924_v22 = vmul.f32 0.5, %v922_v56  ;;  %v1948_v56 = vld [vmem:[%s3089_s29 + $0x1] ss:$0 sm:$0xff] }
 0xa5d   :  { %v2329_v58 = vpop.eup %2328 }
 0xa5e   :  { %v923_v59 = vadd.f32 1.0, %v2329_v58  ;;  %v926_v61 = vmul.f32 %v924_v22, %v904_v37 }
 0xa60   :  { %v925_v60 = vmul.f32 0.5, %v923_v59 }
 0xa62   :  { %v927_v63 = vmul.f32 %v925_v60, %v907_v43  ;;  %v1941_v43 = vld [vmem:[%s3087_s0 + $0x1] ss:$0 sm:$0xff] }
 0xa64   :  { %v928_v3 = vpack.c.bf16 %v927_v63, %v926_v61 }
 0xa66   :  { %2153 = vmatmul.mubr.msk.bf16.vlgmr.msra.gmra.mxu1 %vm186_vm0, %v928_v3 }
 0xa67   :  { %2180 = vmatprep.mubr.msk.bf16.mxu1 %vm2373_vm3, %v2372_v35 }
 0xb26   :  { %v998_v4 = vpop.f32.mrf.mxu1 }
 0xb27   :  { %v1005_v7 = vadd.f32 %v998_v4, %v2749_v46 }
 0xb28   :  { %v2154_v9 = vpop.f32.mrf.mxu1 }
 0xb29   :  { %v2805_v10 = vadd.f32 %v1938_v5, %v1005_v7 }
 0xb2a   :  { %v1001_v11 = vpop.f32.mrf.mxu1 }
 0xb2b   :  { %v1006_v12 = vadd.f32 %v1001_v11, %v2754_v52  ;;  %v1020_v13 = vsel %vm233_vm1, %v2805_v10, 0.0 }
 0xb2c   :  { %1021 = vadd.xlane.f32.xlu0 %v1020_v13  ;;  %v2155_v14 = vpop.f32.mrf.mxu1 }
 0xb2d   :  { %v2810_v16 = vadd.f32 %v1938_v5, %v1006_v12 }
 0xb2f   :  { %v1023_v19 = vsel %vm237_vm2, %v2810_v16, 0.0 }
 0xb30   :  { %1024 = vadd.xlane.f32.xlu0 %v1023_v19 }
 0xbb5   :  { %v1022_v20 = vpop.xlane.xlu0 %1021 }
 0xbb6   :  { %v1026_v21 = vmul.f32 0.03125, %v1022_v20 }
 0xbb8   :  { %v1028_v46 = vsub.f32 %v2805_v10, %v1026_v21 }
 0xbb9   :  { %v1025_v23 = vpop.xlane.xlu0 %1024 }
 0xbba   :  { %v1027_v25 = vmul.f32 0.03125, %v1025_v23  ;;  %v1030_v26 = vmul.f32 %v1028_v46, %v1028_v46 }
 0xbbc   :  { %v1029_v52 = vsub.f32 %v2810_v16, %v1027_v25  ;;  %v1032_v27 = vsel %vm233_vm1, %v1030_v26, 0.0 }
 0xbbd   :  { %1033 = vadd.xlane.f32.xlu0 %v1032_v27 }
 0xbbe   :  { %v1031_v28 = vmul.f32 %v1029_v52, %v1029_v52 }
 0xbc0   :  { %v1035_v29 = vsel %vm237_vm2, %v1031_v28, 0.0 }
 0xbc1   :  { %1036 = vadd.xlane.f32.xlu0 %v1035_v29 }
 0xc46   :  { %v1034_v34 = vpop.xlane.xlu0 %1033 }
 0xc47   :  { %v1038_v36 = vmul.f32 0.03125, %v1034_v34 }
 0xc49   :  { %v1040_v37 = vadd.f32 1e-05, %v1038_v36 }
 0xc4a   :  { %v1037_v38 = vpop.xlane.xlu0 %1036 }
 0xc4b   :  { %2330 = vrsqrt.f32 %v1040_v37  ;;  %v1039_v40 = vmul.f32 0.03125, %v1037_v38 }
 0xc4d   :  { %v1041_v41 = vadd.f32 1e-05, %v1039_v40 }
 0xc4f   :  { %2332 = vrsqrt.f32 %v1041_v41 }
 0xc58   :  { %v2331_v42 = vpop.eup %2330 }
 0xc59   :  { %v1044_v44 = vmul.f32 %v2331_v42, %v1028_v46 }
 0xc5b   :  { %v1052_v48 = vmul.f32 %v1941_v43, %v1044_v44 }
 0xc5c   :  { %v2333_v49 = vpop.eup %2332 }
 0xc5d   :  { %v1045_v50 = vmul.f32 %v2333_v49, %v1029_v52  ;;  %v1060_v53 = vadd.f32 %v1942_v47, %v1052_v48 }
 0xc5f   :  { %v1053_v62 = vmul.f32 %v1941_v43, %v1045_v50 }
 0xc61   :  { %v1061_v54 = vadd.f32 %v1942_v47, %v1053_v62 }
 0xc63   :  { %v1062_v17 = vpack.c.bf16 %v1061_v54, %v1060_v53 }
 0xc65   :  { %2161 = vmatmul.mubr.msk.bf16.vlgmr.msra.gmra.mxu0 %vm233_vm1, %v1062_v17 }
 0xc66   :  { %2166 = vmatprep.mubr.msk.bf16.mxu0 %vm2373_vm3, %v2372_v35 }
 0xd25   :  { %v1125_v55 = vpop.f32.mrf.mxu0 }
 0xd26   :  { %v1126_v59 = vadd.f32 %v1948_v56, %v1125_v55 }
 0xd27   :  { %v2162_v58 = vpop.f32.mrf.mxu0 }
 0xd29   :  { %v1128_v22 = vpop.f32.mrf.mxu0 }
 0xd2a   :  { %v1129_v60 = vadd.f32 %v1948_v56, %v1128_v22 }
 0xd2b   :  { %v2163_v61 = vpop.f32.mrf.mxu0 }
 0xd2c   :  { %v2838_v63 = vpack.c.bf16 %v1129_v60, %v1126_v59 }
 0xd2e   :  { %1201 = vrot.lane.b32.xlu0 %v2838_v63, %s2374_s1  ;;  %v1134_v3 = vsel %vm375_vm4, %v2838_v63, 0 }
 0xd2f   :  { %2165 = vmatpush3.bf16.msra.mxu0 %v1134_v3 }
 0xd30   :  { %2192 = vmatprep.subr.bf16.mxu0 %v2372_v35 }
 0xd32   :  { %2167 = vmatmul.mubr.msk.bf16.vlgmr.msra.gmra.mxu0 %vm365_vm5, %v2597_v0 }
 0xd33   :  { %2170 = vmatprep.mubr.msk.bf16.mxu0 %vm2373_vm3, %v2372_v35 }
 0xd3a   :  { %2171 = vmatmul.mubr.msk.bf16.gmra.mxu0 %vm365_vm5, %v2607_v1 }
 0xd3b   :  { %2174 = vmatprep.mubr.msk.bf16.mxu0 %vm2373_vm3, %v2372_v35 }
 0xd42   :  { %2175 = vmatmul.mubr.msk.bf16.gmra.mxu0 %vm365_vm5, %v2616_v2 }
 0xd43   :  { %2194 = vmatprep.mubr.msk.bf16.mxu0 %vm2373_vm3, %v2372_v35 }
 0xda0   :  { %v1202_v4 = vpop.permute.xlu0 %1201 }
 0xda1   :  { %v1213_v5 = vsel %vm233_vm1, %v1202_v4, 0 }
 0xda2   :  { %2179 = vmatpush3.bf16.xpose.msra.mxu1 %v1213_v5 }
 0xda3   :  { %2206 = vmatprep.subr.bf16.mxu1 %v2372_v35 }
 0xdf2   :  { %v1170_v0 = vpop.f32.mrf.mxu0 }
 0xdf3   :  { %v1192_v1 = vmul.f32 %v1170_v0, %v2627_v6 }
 0xdf4   :  { %v2168_v7 = vpop.f32.mrf.mxu0 }
 0xdf6   :  { %v1173_v9 = vpop.f32.mrf.mxu0 }
 0xdf7   :  { %v1193_v11 = vmul.f32 %v1173_v9, %v2632_v8 }
 0xdf8   :  { %v2169_v12 = vpop.f32.mrf.mxu0 }
 0xdf9   :  { %v1197_v13 = vpack.c.bf16 %v1193_v11, %v1192_v1 }
 0xdfa   :  { %v1178_v14 = vpop.f32.mrf.mxu0 }
 0xdfb   :  { %2181 = vmatmul.mubr.msk.bf16.vlgmr.msra.gmra.mxu1 %vm233_vm1, %v1197_v13  ;;  %v1194_v20 = vmul.f32 %v1178_v14, %v2640_v15 }
 0xdfc   :  { %v2172_v2 = vpop.f32.mrf.mxu0  ;;  %2184 = vmatprep.mubr.msk.bf16.mxu1 %vm2373_vm3, %v2372_v35 }
 0xdfe   :  { %v1181_v19 = vpop.f32.mrf.mxu0 }
 0xdff   :  { %v1195_v21 = vmul.f32 %v1181_v19, %v2645_v18 }
 0xe00   :  { %v2173_v46 = vpop.f32.mrf.mxu0 }
 0xe01   :  { %v1198_v23 = vpack.c.bf16 %v1195_v21, %v1194_v20 }
 0xe02   :  { %v1186_v25 = vpop.f32.mrf.mxu0 }
 0xe03   :  { %v1196_v6 = vmul.f32 %v1186_v25, %v2654_v24  ;;  %2185 = vmatmul.mubr.msk.bf16.gmra.mxu1 %vm233_vm1, %v1198_v23 }
 0xe04   :  { %v2176_v8 = vpop.f32.mrf.mxu0  ;;  %2188 = vmatprep.mubr.msk.bf16.mxu1 %vm2373_vm3, %v2372_v35 }
 0xe05   :  { %v1199_v52 = vpack.c.bf16 %v1196_v6, %v1196_v6 }
 0xe06   :  { %v1189_v26 = vpop.f32.mrf.mxu0 }
 0xe08   :  { %v2177_v27 = vpop.f32.mrf.mxu0 }
 0xe0b   :  { %2189 = vmatmul.mubr.msk.bf16.gmra.mxu1 %vm233_vm1, %v1199_v52 }
 0xe0c   :  { %2212 = vmatprep.mubr.msk.bf16.mxu1 %vm2373_vm3, %v2372_v35 }
 0xebb   :  { %v1249_v15 = vpop.f32.mrf.mxu1 }
 0xebc   :  { %v1271_v18 = vmul.f32 0.35355338, %v1249_v15 }
 0xebd   :  { %v2182_v28 = vpop.f32.mrf.mxu1 }
 0xebe   :  { %v1276_v29 = vadd.f32 %v1271_v18, %v2666_v33 }
 0xebf   :  { %v1252_v24 = vpop.f32.mrf.mxu1 }
 0xec0   :  { %v1272_v31 = vmul.f32 0.35355338, %v1252_v24  ;;  %v1281_v32 = vsel %vm365_vm5, %v1276_v29, -inf }
 0xec1   :  { %1282 = vmax.xlane.f32.xlu1 %v1281_v32  ;;  %v2183_v34 = vpop.f32.mrf.mxu1 }
 0xec2   :  { %v1277_v36 = vadd.f32 %v1272_v31, %v2672_v39 }
 0xec3   :  { %v1257_v37 = vpop.f32.mrf.mxu1 }
 0xec4   :  { %v1273_v38 = vmul.f32 0.35355338, %v1257_v37  ;;  %v1284_v40 = vsel %vm365_vm5, %v1277_v36, -inf }
 0xec5   :  { %1285 = vmax.xlane.f32.xlu1 %v1284_v40  ;;  %v2186_v41 = vpop.f32.mrf.mxu1 }
 0xec6   :  { %v1278_v42 = vadd.f32 %v1273_v38, %v2679_v45 }
 0xec7   :  { %v1260_v43 = vpop.f32.mrf.mxu1 }
 0xec8   :  { %v1274_v44 = vmul.f32 0.35355338, %v1260_v43  ;;  %v1287_v33 = vsel %vm365_vm5, %v1278_v42, -inf }
 0xec9   :  { %1288 = vmax.xlane.f32.xlu1 %v1287_v33  ;;  %v2187_v47 = vpop.f32.mrf.mxu1 }
 0xeca   :  { %v1279_v48 = vadd.f32 %v1274_v44, %v2686_v51 }
 0xecb   :  { %v1265_v49 = vpop.f32.mrf.mxu1 }
 0xecc   :  { %v1275_v50 = vmul.f32 0.35355338, %v1265_v49  ;;  %v1290_v39 = vsel %vm365_vm5, %v1279_v48, -inf }
 0xecd   :  { %1291 = vmax.xlane.f32.xlu1 %v1290_v39  ;;  %v2190_v53 = vpop.f32.mrf.mxu1  ;;  %v2366_v39 = vld [vmem:[%s3091_s2 + $0x20] sm:$0xff] }
 0xece   :  { %v1280_v62 = vadd.f32 %v1275_v50, %v2693_v57 }
 0xecf   :  { %v1268_v54 = vpop.f32.mrf.mxu1 }
 0xed0   :  { %v1293_v17 = vsel %vm365_vm5, %v1280_v62, -inf }
 0xed1   :  { %1294 = vmax.xlane.f32.xlu0 %v1293_v17  ;;  %v2191_v45 = vpop.f32.mrf.mxu1  ;;  %v2367_v17 = vld [vmem:[%s3091_s2 + $0x18] sm:$0xff] }
 0xf4a   :  { %v1283_v55 = vpop.xlane.xlu1 %1282 }
 0xf4b   :  { %v1296_v56 = vsub.f32 %v1276_v29, %v1283_v55 }
 0xf4d   :  { %v1301_v58 = vmul.f32 1.442695, %v1296_v56 }
 0xf4e   :  { %v1286_v22 = vpop.xlane.xlu1 %1285 }
 0xf4f   :  { %2334 = vpow2.f32 %v1301_v58  ;;  %v1297_v59 = vsub.f32 %v1277_v36, %v1286_v22  ;;  %v2368_v58 = vld [vmem:[%s3091_s2 + $0x10] sm:$0xff] }
 0xf51   :  { %v1303_v51 = vmul.f32 1.442695, %v1297_v59 }
 0xf52   :  { %v1289_v60 = vpop.xlane.xlu1 %1288 }
 0xf53   :  { %2336 = vpow2.f32 %v1303_v51  ;;  %v1298_v61 = vsub.f32 %v1278_v42, %v1289_v60  ;;  %v2369_v51 = vld [vmem:[%s3091_s2 + $0x8] sm:$0xff] }
 0xf55   :  { %v1305_v3 = vmul.f32 1.442695, %v1298_v61 }
 0xf56   :  { %v1292_v4 = vpop.xlane.xlu1 %1291 }
 0xf57   :  { %2338 = vpow2.f32 %v1305_v3  ;;  %v1299_v5 = vsub.f32 %v1279_v48, %v1292_v4  ;;  %v2370_v3 = vld [vmem:[%s3091_s2] sm:$0xff] }
 0xf59   :  { %v1307_v57 = vmul.f32 1.442695, %v1299_v5 }
 0xf5a   :  { %v1295_v0 = vpop.xlane.xlu0 %1294 }
 0xf5b   :  { %2340 = vpow2.f32 %v1307_v57  ;;  %v1300_v7 = vsub.f32 %v1280_v62, %v1295_v0  ;;  %v2288_v57 = vld [vmem:[%s3051_s11 + $0x18] sm:$0xff]   ;;  %v2289_v0 = vld [vmem:[%s3051_s11 + $0x10] sm:$0xff]  }
 0xf5c   :  { %v2335_v9 = vpop.eup %2334 }
 0xf5d   :  { %v1309_v1 = vmul.f32 1.442695, %v1300_v7  ;;  %v1311_v11 = vsel %vm365_vm5, %v2335_v9, 0.0 }
 0xf5e   :  { %1312 = vadd.xlane.f32.xlu1 %v1311_v11 }
 0xf5f   :  { %2342 = vpow2.f32 %v1309_v1 }
 0xf60   :  { %v2337_v12 = vpop.eup %2336 }
 0xf61   :  { %v1314_v13 = vsel %vm365_vm5, %v2337_v12, 0.0 }
 0xf62   :  { %1315 = vadd.xlane.f32.xlu1 %v1314_v13  ;;  %v1970_v13 = vld [vmem:[%s3052_s12 + $0x1] ss:$0 sm:$0xff] }
 0xf64   :  { %v2339_v14 = vpop.eup %2338 }
 0xf65   :  { %v1317_v2 = vsel %vm365_vm5, %v2339_v14, 0.0 }
 0xf66   :  { %1318 = vadd.xlane.f32.xlu1 %v1317_v2 }
 0xf68   :  { %v2341_v19 = vpop.eup %2340 }
 0xf69   :  { %v1320_v20 = vsel %vm365_vm5, %v2341_v19, 0.0 }
 0xf6a   :  { %1321 = vadd.xlane.f32.xlu1 %v1320_v20 }
 0xf6c   :  { %v2343_v21 = vpop.eup %2342 }
 0xf6d   :  { %v1323_v46 = vsel %vm365_vm5, %v2343_v21, 0.0 }
 0xf6e   :  { %1324 = vadd.xlane.f32.xlu1 %v1323_v46 }
 0xf7f   :  { %1339 = vrot.lane.b32.xlu1 %v2838_v63, %s2375_s6 }
 0xfe7   :  { %v1313_v23 = vpop.xlane.xlu1 %1312 }
 0xfe8   :  { %2344 = vrcp.f32 %v1313_v23 }
 0xfeb   :  { %v1316_v25 = vpop.xlane.xlu1 %1315 }
 0xfec   :  { %2346 = vrcp.f32 %v1316_v25 }
 0xfef   :  { %v1319_v6 = vpop.xlane.xlu1 %1318 }
 0xff0   :  { %2348 = vrcp.f32 %v1319_v6 }
 0xff3   :  { %v1322_v8 = vpop.xlane.xlu1 %1321 }
 0xff4   :  { %2350 = vrcp.f32 %v1322_v8 }
 0xff5   :  { %v2345_v26 = vpop.eup %2344 }
 0xff6   :  { %v1331_v52 = vmul.f32 %v2345_v26, %v2335_v9 }
 0xff7   :  { %v1325_v27 = vpop.xlane.xlu1 %1324 }
 0xff8   :  { %1759 = vst.msk [vmem:[%s3059_s24] sm:$0xff] %vm365_vm5, %v1331_v52  ;;  %2352 = vrcp.f32 %v1325_v27 }
 0xff9   :  { %v2347_v15 = vpop.eup %2346 }
 0xffa   :  { %v1332_v18 = vmul.f32 %v2347_v15, %v2337_v12 }
 0xffb   :  { %v1340_v63 = vpop.permute.xlu1 %1339 }
 0xffc   :  { %1760 = vst.msk [vmem:[%s3059_s24 + $0x8] sm:$0xff] %vm365_vm5, %v1332_v18  ;;  %v1351_v28 = vsel %vm375_vm4, %v1340_v63, 0  ;;  %v1336_v24 = vpack.c.bf16 %v1332_v18, %v1331_v52 }
 0xffd   :  { %v2349_v29 = vpop.eup %2348  ;;  %2193 = vmatpush3.bf16.msra.mxu0 %v1351_v28 }
 0xffe   :  { %v1333_v31 = vmul.f32 %v2349_v29, %v2339_v14  ;;  %2232 = vmatprep.subr.bf16.mxu0 %v2372_v35  ;;  %v2290_v29 = vld [vmem:[%s3053_s15 + $0x18] sm:$0xff]  }
0x1000   :  { %2195 = vmatmul.mubr.msk.bf16.vlgmr.msra.gmra.mxu0 %vm365_vm5, %v1336_v24  ;;  %1761 = vst.msk [vmem:[%s3059_s24 + $0x10] sm:$0xff] %vm365_vm5, %v1333_v31  ;;  %v2291_v24 = vld [vmem:[%s3053_s15 + $0x10] sm:$0xff]  }
0x1001   :  { %v2351_v32 = vpop.eup %2350  ;;  %2198 = vmatprep.mubr.msk.bf16.mxu0 %vm2373_vm3, %v2372_v35 }
0x1002   :  { %v1334_v34 = vmul.f32 %v2351_v32, %v2341_v19 }
0x1004   :  { %1762 = vst.msk [vmem:[%s3059_s24 + $0x18] sm:$0xff] %vm365_vm5, %v1334_v34  ;;  %v1337_v37 = vpack.c.bf16 %v1334_v34, %v1333_v31 }
0x1005   :  { %v2353_v36 = vpop.eup %2352 }
0x1006   :  { %v1335_v38 = vmul.f32 %v2353_v36, %v2343_v21 }
0x1008   :  { %2199 = vmatmul.mubr.msk.bf16.gmra.mxu0 %vm365_vm5, %v1337_v37  ;;  %1763 = vst.msk [vmem:[%s3059_s24 + $0x20] sm:$0xff] %vm365_vm5, %v1335_v38  ;;  %v1338_v40 = vpack.c.bf16 %v1335_v38, %v1335_v38 }
0x1009   :  { %2202 = vmatprep.mubr.msk.bf16.mxu0 %vm2373_vm3, %v2372_v35 }
0x1010   :  { %2203 = vmatmul.mubr.msk.bf16.gmra.mxu0 %vm365_vm5, %v1338_v40 }
0x1011   :  { %2240 = vmatprep.mubr.msk.bf16.mxu0 %vm2373_vm3, %v2372_v35 }
0x10c0   :  { %v1387_v41 = vpop.f32.mrf.mxu0 }
0x10c1   :  { %v1409_v4 = vmul.f32 %v2370_v3, %v1387_v41 }
0x10c2   :  { %v2196_v42 = vpop.f32.mrf.mxu0 }
0x10c3   :  { %v1973_v42 = vld [vmem:[%s3054_s13 + $0x1] ss:$0 sm:$0xff] }
0x10c4   :  { %v1390_v43 = vpop.f32.mrf.mxu0 }
0x10c5   :  { %v1410_v60 = vmul.f32 %v2369_v51, %v1390_v43 }
0x10c6   :  { %v2197_v44 = vpop.f32.mrf.mxu0 }
0x10c7   :  { %v1414_v5 = vpack.c.bf16 %v1410_v60, %v1409_v4 }
0x10c8   :  { %v1395_v33 = vpop.f32.mrf.mxu0 }
0x10c9   :  { %v1411_v22 = vmul.f32 %v2368_v58, %v1395_v33 }
0x10ca   :  { %v2200_v47 = vpop.f32.mrf.mxu0 }
0x10cb   :  { %v1974_v47 = vld [vmem:[%s3055_s14 + $0x1] ss:$0 sm:$0xff] }
0x10cc   :  { %v1398_v48 = vpop.f32.mrf.mxu0 }
0x10cd   :  { %v1412_v45 = vmul.f32 %v2367_v17, %v1398_v48  ;;  %v2295_v17 = vld [vmem:[%s3056_s17 + $0x20] sm:$0xff]  }
0x10ce   :  { %v2201_v49 = vpop.f32.mrf.mxu0 }
0x10cf   :  { %v1415_v61 = vpack.c.bf16 %v1412_v45, %v1411_v22  ;;  %v1980_v45 = vld [vmem:[%s3057_s16 + $0x1] ss:$0 sm:$0xff] }
0x10d0   :  { %v1403_v50 = vpop.f32.mrf.mxu0 }
0x10d1   :  { %v1413_v53 = vmul.f32 %v2366_v39, %v1403_v50 }
0x10d2   :  { %v2204_v62 = vpop.f32.mrf.mxu0 }
0x10d3   :  { %v1416_v54 = vpack.c.bf16 %v1413_v53, %v1413_v53  ;;  %v2292_v53 = vld [vmem:[%s3056_s17 + $0x38] sm:$0xff]   ;;  %v2293_v62 = vld [vmem:[%s3056_s17 + $0x30] sm:$0xff]  }
0x10d4   :  { %v1406_v55 = vpop.f32.mrf.mxu0  ;;  %2233 = vmatpush3.bf16.msra.mxu0 %v2292_v53 }
0x10d5   :  { %v1418_v56 = vsel %vm681_vm6, %v1416_v54, 0  ;;  %2234 = vmatprep.subr.bf16.mxu0 %v2372_v35  ;;  %v2294_v54 = vld [vmem:[%s3056_s17 + $0x28] sm:$0xff]  }
0x10d6   :  { %v2205_v59 = vpop.f32.mrf.mxu0  ;;  %2207 = vmatpush3.bf16.msra.mxu1 %v1418_v56 }
0x10d7   :  { %2208 = vmatprep.subr.bf16.mxu1 %v2372_v35 }
0x10d8   :  { %2235 = vmatpush3.bf16.msra.mxu0 %v2293_v62 }
0x10d9   :  { %2236 = vmatprep.subr.bf16.mxu0 %v2372_v35 }
0x10da   :  { %2209 = vmatpush3.bf16.msra.mxu1 %v1415_v61 }
0x10db   :  { %2210 = vmatprep.subr.bf16.mxu1 %v2372_v35 }
0x10dc   :  { %2237 = vmatpush3.bf16.msra.mxu0 %v2294_v54 }
0x10dd   :  { %2238 = vmatprep.subr.bf16.mxu0 %v2372_v35 }
0x10de   :  { %2211 = vmatpush3.bf16.msra.mxu1 %v1414_v5 }
0x10df   :  { %2216 = vmatprep.subr.bf16.mxu1 %v2372_v35 }
0x10e0   :  { %2239 = vmatpush3.bf16.msra.mxu0 %v2295_v17 }
0x10e1   :  { %2213 = vmatmul.mubr.msk.bf16.vlgmr.msra.gmra.mxu1 %vm677_vm7, %v2727_v30 }
0x10e2   :  { %2220 = vmatprep.mubr.msk.bf16.mxu1 %vm2373_vm3, %v2372_v35  ;;  %2217 = vmatpush3.bf16.msra.mxu1 %v2288_v57 }
0x10e3   :  { %2218 = vmatprep.subr.bf16.mxu1 %v2372_v35 }
0x10e6   :  { %2219 = vmatpush3.bf16.msra.mxu1 %v2289_v0 }
0x10e7   :  { %2224 = vmatprep.subr.bf16.mxu1 %v2372_v35 }
0x11a1   :  { %v1454_v7 = vpop.f32.mrf.mxu1 }
0x11a3   :  { %v2214_v9 = vpop.f32.mrf.mxu1 }
0x11a5   :  { %v1457_v30 = vpop.f32.mrf.mxu1 }
0x11a6   :  { %v1461_v1 = vpack.c.bf16 %v1457_v30, %v1454_v7 }
0x11a7   :  { %v2215_v11 = vpop.f32.mrf.mxu1 }
0x11a8   :  { %2221 = vmatmul.mubr.msk.bf16.vlgmr.msra.gmra.mxu1 %vm233_vm1, %v1461_v1 }
0x11a9   :  { %2228 = vmatprep.mubr.msk.bf16.mxu1 %vm2373_vm3, %v2372_v35  ;;  %2225 = vmatpush3.bf16.msra.mxu1 %v2290_v29 }
0x11aa   :  { %2226 = vmatprep.subr.bf16.mxu1 %v2372_v35 }
0x11ad   :  { %2227 = vmatpush3.bf16.msra.mxu1 %v2291_v24 }
0x11ae   :  { %2244 = vmatprep.subr.bf16.mxu1 %v2372_v35 }
0x1268   :  { %v1516_v12 = vpop.f32.mrf.mxu1 }
0x1269   :  { %v1523_v14 = vadd.f32 %v1516_v12, %v2805_v10 }
0x126a   :  { %v2222_v2 = vpop.f32.mrf.mxu1 }
0x126b   :  { %v2959_v19 = vadd.f32 %v1970_v13, %v1523_v14 }
0x126c   :  { %v1519_v20 = vpop.f32.mrf.mxu1 }
0x126d   :  { %v1524_v21 = vadd.f32 %v1519_v20, %v2810_v16  ;;  %v1539_v46 = vsel %vm233_vm1, %v2959_v19, 0.0 }
0x126e   :  { %1540 = vadd.xlane.f32.xlu0 %v1539_v46  ;;  %v2223_v23 = vpop.f32.mrf.mxu1 }
0x126f   :  { %v2964_v25 = vadd.f32 %v1970_v13, %v1524_v21 }
0x1271   :  { %v1542_v6 = vsel %vm237_vm2, %v2964_v25, 0.0 }
0x1272   :  { %1543 = vadd.xlane.f32.xlu0 %v1542_v6  ;;  %v1998_v6 = vld [vmem:[%s3058_s18 + $0x1] ss:$0 sm:$0xff] }
0x12f7   :  { %v1541_v8 = vpop.xlane.xlu0 %1540 }
0x12f8   :  { %v1545_v26 = vmul.f32 0.03125, %v1541_v8 }
0x12fa   :  { %v1547_v10 = vsub.f32 %v2959_v19, %v1545_v26 }
0x12fb   :  { %v1544_v52 = vpop.xlane.xlu0 %1543 }
0x12fc   :  { %v1546_v27 = vmul.f32 0.03125, %v1544_v52  ;;  %v1549_v15 = vmul.f32 %v1547_v10, %v1547_v10 }
0x12fe   :  { %v1548_v16 = vsub.f32 %v2964_v25, %v1546_v27  ;;  %v1551_v18 = vsel %vm233_vm1, %v1549_v15, 0.0 }
0x12ff   :  { %1552 = vadd.xlane.f32.xlu0 %v1551_v18 }
0x1300   :  { %v1550_v63 = vmul.f32 %v1548_v16, %v1548_v16 }
0x1302   :  { %v1554_v28 = vsel %vm237_vm2, %v1550_v63, 0.0 }
0x1303   :  { %1555 = vadd.xlane.f32.xlu1 %v1554_v28 }
0x1388   :  { %v1553_v31 = vpop.xlane.xlu0 %1552 }
0x1389   :  { %v1557_v32 = vmul.f32 0.03125, %v1553_v31 }
0x138b   :  { %v1559_v34 = vadd.f32 1e-05, %v1557_v32 }
0x138c   :  { %v1556_v36 = vpop.xlane.xlu1 %1555 }
0x138d   :  { %2354 = vrsqrt.f32 %v1559_v34  ;;  %v1558_v37 = vmul.f32 0.03125, %v1556_v36 }
0x138f   :  { %v1560_v38 = vadd.f32 1e-05, %v1558_v37 }
0x1391   :  { %2356 = vrsqrt.f32 %v1560_v38  ;;  %v2296_v38 = vld [vmem:[%s3060_s21 + $0x8] sm:$0xff]  }
0x139a   :  { %v2355_v40 = vpop.eup %2354 }
0x139b   :  { %v1563_v41 = vmul.f32 %v2355_v40, %v1547_v10  ;;  %v2297_v40 = vld [vmem:[%s3060_s21] sm:$0xff]  }
0x139d   :  { %v1571_v33 = vmul.f32 %v1973_v42, %v1563_v41 }
0x139e   :  { %v2357_v43 = vpop.eup %2356 }
0x139f   :  { %v1564_v44 = vmul.f32 %v2357_v43, %v1548_v16  ;;  %v1579_v49 = vadd.f32 %v1974_v47, %v1571_v33 }
0x13a1   :  { %v1572_v48 = vmul.f32 %v1973_v42, %v1564_v44 }
0x13a3   :  { %v1580_v50 = vadd.f32 %v1974_v47, %v1572_v48 }
0x13a5   :  { %v1581_v39 = vpack.c.bf16 %v1580_v50, %v1579_v49  ;;  %v1999_v50 = vld [vmem:[%s3061_s19] ss:$0 sm:$0xff] }
0x13a7   :  { %2229 = vmatmul.mubr.msk.bf16.vlgmr.msra.gmra.mxu1 %vm233_vm1, %v1581_v39 }
0x13a8   :  { %2248 = vmatprep.mubr.msk.bf16.mxu1 %vm2373_vm3, %v2372_v35  ;;  %2245 = vmatpush3.bf16.msra.mxu1 %v2296_v38 }
0x13a9   :  { %2246 = vmatprep.subr.bf16.mxu1 %v2372_v35  ;;  %v2000_v35 = vld [vmem:[%s3062_s20] ss:$0 sm:$0xff] }
0x13ac   :  { %2247 = vmatpush3.bf16.msra.mxu1 %v2297_v40 }
0x1467   :  { %v1644_v55 = vpop.f32.mrf.mxu1 }
0x1468   :  { %v1645_v56 = vadd.f32 %v1980_v45, %v1644_v55 }
0x1469   :  { %v2230_v58 = vpop.f32.mrf.mxu1 }
0x146a   :  { %v1651_v22 = vmul.f32 %v1645_v56, %v1645_v56 }
0x146b   :  { %v1647_v59 = vpop.f32.mrf.mxu1 }
0x146c   :  { %v1653_v51 = vmul.f32 %v1651_v22, %v1645_v56  ;;  %v1648_v60 = vadd.f32 %v1980_v45, %v1647_v59 }
0x146d   :  { %v2231_v61 = vpop.f32.mrf.mxu1 }
0x146e   :  { %v1655_v3 = vmul.f32 0.044715, %v1653_v51  ;;  %v1652_v4 = vmul.f32 %v1648_v60, %v1648_v60 }
0x1470   :  { %v1657_v5 = vadd.f32 %v1655_v3, %v1645_v56  ;;  %v1654_v57 = vmul.f32 %v1652_v4, %v1648_v60 }
0x1472   :  { %v1659_v0 = vmul.f32 0.7978846, %v1657_v5  ;;  %v1656_v7 = vmul.f32 0.044715, %v1654_v57 }
0x1474   :  { %2358 = vtanh.f32 %v1659_v0  ;;  %v1658_v9 = vadd.f32 %v1656_v7, %v1648_v60 }
0x1476   :  { %v1660_v30 = vmul.f32 0.7978846, %v1658_v9 }
0x1478   :  { %2360 = vtanh.f32 %v1660_v30 }
0x1481   :  { %v2359_v1 = vpop.eup %2358 }
0x1482   :  { %v1663_v11 = vadd.f32 1.0, %v2359_v1 }
0x1484   :  { %v1665_v13 = vmul.f32 0.5, %v1663_v11 }
0x1485   :  { %v2361_v12 = vpop.eup %2360 }
0x1486   :  { %v1664_v14 = vadd.f32 1.0, %v2361_v12  ;;  %v1667_v20 = vmul.f32 %v1665_v13, %v1645_v56  ;;  %v2001_v56 = vld [vmem:[%s3063_s22] ss:$0 sm:$0xff] }
0x1488   :  { %v1666_v2 = vmul.f32 0.5, %v1664_v14 }
0x148a   :  { %v1668_v21 = vmul.f32 %v1666_v2, %v1648_v60 }
0x148c   :  { %v1669_v46 = vpack.c.bf16 %v1668_v21, %v1667_v20 }
0x148e   :  { %2241 = vmatmul.mubr.msk.bf16.vlgmr.msra.gmra.mxu0 %vm186_vm0, %v1669_v46 }
0x154e   :  { %v1740_v23 = vpop.f32.mrf.mxu0 }
0x154f   :  { %v1747_v8 = vadd.f32 %v1740_v23, %v2959_v19 }
0x1550   :  { %v2242_v26 = vpop.f32.mrf.mxu0 }
0x1551   :  { %v1757_v10 = vadd.f32 %v1998_v6, %v1747_v8 }
0x1552   :  { %v1743_v52 = vpop.f32.mrf.mxu0 }
0x1553   :  { %v1748_v27 = vadd.f32 %v1743_v52, %v2964_v25  ;;  %v1766_v15 = vsel %vm233_vm1, %v1757_v10, 0.0 }
0x1554   :  { %1767 = vadd.xlane.f32.xlu0 %v1766_v15  ;;  %v2243_v16 = vpop.f32.mrf.mxu0 }
0x1555   :  { %v1758_v18 = vadd.f32 %v1998_v6, %v1748_v27 }
0x1557   :  { %v1769_v63 = vsel %vm237_vm2, %v1758_v18, 0.0 }
0x1558   :  { %1770 = vadd.xlane.f32.xlu0 %v1769_v63 }
0x15dd   :  { %v1768_v28 = vpop.xlane.xlu0 %1767 }
0x15de   :  { %v1772_v29 = vmul.f32 0.03125, %v1768_v28 }
0x15e0   :  { %v1774_v24 = vsub.f32 %v1757_v10, %v1772_v29 }
0x15e1   :  { %v1771_v31 = vpop.xlane.xlu0 %1770 }
0x15e2   :  { %v1773_v32 = vmul.f32 0.03125, %v1771_v31  ;;  %v1776_v34 = vmul.f32 %v1774_v24, %v1774_v24 }
0x15e4   :  { %v1775_v19 = vsub.f32 %v1758_v18, %v1773_v32  ;;  %v1778_v36 = vsel %vm233_vm1, %v1776_v34, 0.0 }
0x15e5   :  { %1779 = vadd.xlane.f32.xlu0 %v1778_v36 }
0x15e6   :  { %v1777_v37 = vmul.f32 %v1775_v19, %v1775_v19 }
0x15e8   :  { %v1781_v25 = vsel %vm237_vm2, %v1777_v37, 0.0 }
0x15e9   :  { %1782 = vadd.xlane.f32.xlu0 %v1781_v25 }
0x166e   :  { %v1780_v41 = vpop.xlane.xlu0 %1779 }
0x166f   :  { %v1784_v42 = vmul.f32 0.03125, %v1780_v41 }
0x1671   :  { %v1786_v43 = vadd.f32 1e-05, %v1784_v42 }
0x1672   :  { %v1783_v44 = vpop.xlane.xlu0 %1782 }
0x1673   :  { %2362 = vrsqrt.f32 %v1786_v43  ;;  %v1785_v33 = vmul.f32 0.03125, %v1783_v44 }
0x1675   :  { %v1787_v47 = vadd.f32 1e-05, %v1785_v33 }
0x1677   :  { %2364 = vrsqrt.f32 %v1787_v47 }
0x1680   :  { %v2363_v48 = vpop.eup %2362 }
0x1681   :  { %v1790_v49 = vmul.f32 %v2363_v48, %v1774_v24 }
0x1683   :  { %v1798_v62 = vmul.f32 %v1999_v50, %v1790_v49 }
0x1684   :  { %v2365_v39 = vpop.eup %2364 }
0x1685   :  { %v1791_v53 = vmul.f32 %v2365_v39, %v1775_v19  ;;  %v1806_v17 = vadd.f32 %v2000_v35, %v1798_v62 }
0x1687   :  { %v1799_v54 = vmul.f32 %v1999_v50, %v1791_v53 }
0x1689   :  { %v1807_v45 = vadd.f32 %v2000_v35, %v1799_v54 }
0x168b   :  { %v1808_v55 = vpack.c.bf16 %v1807_v45, %v1806_v17 }
0x168d   :  { %2249 = vmatmul.mubr.msk.bf16.vlgmr.msra.gmra.mxu1 %vm233_vm1, %v1808_v55 }
0x174d   :  { %v1869_v58 = vpop.f32.mrf.mxu1 }
0x174e   :  { %v1870_v22 = vadd.f32 %v2001_v56, %v1869_v58 }
0x174f   :  { %v2250_v59 = vpop.f32.mrf.mxu1 }
0x1750   :  { %1877 = vst.msk [vmem:[%s3064_s23] sm:$0xff] %vm1876_vm8, %v1870_v22 }
0x1751   :  { %v1872_v51 = vpop.f32.mrf.mxu1 }
0x1752   :  { %v1873_v60 = vadd.f32 %v2001_v56, %v1872_v51 }
0x1753   :  { %v2251_v61 = vpop.f32.mrf.mxu1 }
0x1754   :  { %1879 = vst.msk [vmem:[%s3064_s23 + $0x8] sm:$0x3] %vm1878_vm9, %v1873_v60 }

</bundles_post_ra>
